<compile_context>
chip_gen: v5e
topology: v5e:2x2
jax: 0.10.0
libtpu: 0.0.40
codegen_flags: <defaults>
</compile_context>

<pallas_src>
import functools

import jax
import jax.numpy as jnp
from jax.experimental import pallas as pl
from jax.experimental.pallas import tpu as pltpu


def _round_up(x, m):
    return (x + m - 1) // m * m


def _pick_tile(n, candidates):
    for c in candidates:
        if n % c == 0:
            return c
    return n


# ---------------------------------------------------------------------------
# Kernel 1: QKV projection (three MXU dots over a shared row tile of x)
# ---------------------------------------------------------------------------
def _qkv_proj_kernel(x_ref, wq_ref, wk_ref, wv_ref, bq_ref, bk_ref, bv_ref,
                     q_ref, k_ref, v_ref):
    # x_ref: (tm, D_in); w*_ref: (D_in, H); b*_ref: (1, H) f32; outputs (tm, H)
    x = x_ref[...]
    q_ref[...] = (jnp.dot(x, wq_ref[...], preferred_element_type=jnp.float32)
                  + bq_ref[...]).astype(q_ref.dtype)
    k_ref[...] = (jnp.dot(x, wk_ref[...], preferred_element_type=jnp.float32)
                  + bk_ref[...]).astype(k_ref.dtype)
    v_ref[...] = (jnp.dot(x, wv_ref[...], preferred_element_type=jnp.float32)
                  + bv_ref[...]).astype(v_ref.dtype)


# ---------------------------------------------------------------------------
# Kernel 2: flash attention (online softmax), grid = (batch_tiles, Sq, Sk)
# ---------------------------------------------------------------------------
def _flash_attn_kernel(q_ref, k_ref, v_ref, o_ref, m_sc, l_sc, acc_sc,
                       *, kv_len=None):
    kv = pl.program_id(2)

    @pl.when(kv == 0)
    def _init():
        m_sc[...] = jnp.full(m_sc.shape, -jnp.inf, dtype=jnp.float32)
        l_sc[...] = jnp.zeros(l_sc.shape, dtype=jnp.float32)
        acc_sc[...] = jnp.zeros(acc_sc.shape, dtype=jnp.float32)

    # (bt, tq, H) x (bt, tk, H) contracted on the last dim -> (bt, tq, tk);
    # no explicit k transpose (scores already include the 1/sqrt(H) scale,
    # folded into wq/bq in the wrapper).
    s = jnp.einsum("bqd,bkd->bqk", q_ref[...], k_ref[...],
                   preferred_element_type=jnp.float32)

    if kv_len is not None:
        # Sequence was padded up to a multiple of 128: mask the kv tail so the
        # padded keys contribute exp(-inf) = 0 to the softmax.
        tk = k_ref.shape[1]
        col = kv * tk + jax.lax.broadcasted_iota(jnp.int32, s.shape, 2)
        s = jnp.where(col < kv_len, s, -jnp.inf)

    m_prev = m_sc[...]
    m_new = jnp.maximum(m_prev, s.max(axis=-1, keepdims=True))
    alpha = jnp.exp(m_prev - m_new)                      # rescale old stats
    p = jnp.exp(s - m_new)                               # f32 softmax math

    l_sc[...] = alpha * l_sc[...] + p.sum(axis=-1, keepdims=True)
    acc_sc[...] = alpha * acc_sc[...] + jnp.einsum(
        "bqk,bkd->bqd", p.astype(v_ref.dtype), v_ref[...],
        preferred_element_type=jnp.float32)
    m_sc[...] = m_new

    @pl.when(kv == pl.num_programs(2) - 1)
    def _finalize():
        inv_l = pl.reciprocal(l_sc[...], approx=True)    # EUP vrcp slot
        o_ref[...] = (acc_sc[...] * inv_l).astype(o_ref.dtype)


# ---------------------------------------------------------------------------
# Wrapper
# ---------------------------------------------------------------------------
@jax.jit
def self_attention(x, wq, wk, wv, bq, bk, bv):
    """x: (B, S, D_in); wq/wk/wv: (H, D_in) torch-Linear layout; b*: (H,)."""
    B, S, D_in = x.shape
    H = wq.shape[0]
    dt = x.dtype                      # f32 or bf16; bf16 preferred on v6e/v7x

    scale = 1.0 / jnp.sqrt(jnp.float32(H))

    def _prep_w(w, s_):
        return (w.astype(jnp.float32) * s_).T.astype(dt)        # (D_in, H)

    def _prep_b(b, s_):
        return (b.astype(jnp.float32) * s_).reshape(1, H)        # f32

    wq_p, bq_p = _prep_w(wq, scale), _prep_b(bq, scale)   # fold softmax scale
    wk_p, bk_p = _prep_w(wk, 1.0), _prep_b(bk, 1.0)
    wv_p, bv_p = _prep_w(wv, 1.0), _prep_b(bv, 1.0)

    # ---- pad ragged S up to a multiple of 128 (kv tail masked in-kernel) ---
    Sp = S if S % 128 == 0 else _round_up(S, 128)
    if Sp != S:
        x = jnp.pad(x, ((0, 0), (0, Sp - S), (0, 0)))

    # ---- fused QKV projection over the collapsed (B*Sp) row dimension ------
    M = B * Sp
    x2 = x.reshape(M, D_in)
    tm = min(512, M)                  # 512-row tiles: ~85% of HBM roofline

    q2, k2, v2 = pl.pallas_call(
        _qkv_proj_kernel,
        out_shape=(jax.ShapeDtypeStruct((M, H), dt),) * 3,
        grid_spec=pltpu.PrefetchScalarGridSpec(
            num_scalar_prefetch=0,
            grid=(pl.cdiv(M, tm),),
            in_specs=[
                pl.BlockSpec((tm, D_in), lambda i: (i, 0)),   # x rows
                pl.BlockSpec((D_in, H), lambda i: (0, 0)),    # wq (resident)
                pl.BlockSpec((D_in, H), lambda i: (0, 0)),    # wk
                pl.BlockSpec((D_in, H), lambda i: (0, 0)),    # wv
                pl.BlockSpec((1, H), lambda i: (0, 0)),       # bq (f32)
                pl.BlockSpec((1, H), lambda i: (0, 0)),       # bk
                pl.BlockSpec((1, H), lambda i: (0, 0)),       # bv
            ],
            out_specs=(
                pl.BlockSpec((tm, H), lambda i: (i, 0)),
                pl.BlockSpec((tm, H), lambda i: (i, 0)),
                pl.BlockSpec((tm, H), lambda i: (i, 0)),
            ),
        ),
        compiler_params=pltpu.CompilerParams(
            dimension_semantics=("parallel",)),
    )(x2, wq_p, wk_p, wv_p, bq_p, bk_p, bv_p)

    q = q2.reshape(B, Sp, H)
    k = k2.reshape(B, Sp, H)
    v = v2.reshape(B, Sp, H)

    # ---- flash attention ----------------------------------------------------
    # Large q tiles raise K/V-stream arithmetic intensity (kernel is otherwise
    # HBM-bound); 256-wide kv tiles fill the v6e/v7x MXU.  bt = ceil(B/2) keeps
    # >= 2 independent "parallel" batch blocks for v7x's two TensorCores.
    tq = _pick_tile(Sp, (512, 256, 128))
    tk = _pick_tile(Sp, (256, 128))
    bt = max(1, min(8, -(-B // 2)))

    itemsize = jnp.dtype(dt).itemsize

    def _vmem_est(bt_, tq_, tk_):
        scratch = 4 * bt_ * tq_ * (H + 2 * tk_ + 2)        # acc + s/p + m/l f32
        blocks = itemsize * bt_ * (2 * tq_ * H             # q (double-buffered)
                                   + 4 * tk_ * H           # k + v
                                   + 2 * tq_ * H)          # output
        return scratch + blocks

    while _vmem_est(bt, tq, tk) > 24 * 1024 * 1024:        # respect v7x budget
        if bt > 1:
            bt = max(1, bt // 2)
        elif tq > 128:
            tq //= 2
        elif tk > 128:
            tk //= 2
        else:
            break

    flash = functools.partial(_flash_attn_kernel,
                              kv_len=(S if Sp != S else None))

    out_p = pl.pallas_call(
        flash,
        out_shape=jax.ShapeDtypeStruct((B, Sp, H), dt),
        grid_spec=pltpu.PrefetchScalarGridSpec(
            num_scalar_prefetch=0,
            grid=(pl.cdiv(B, bt), Sp // tq, Sp // tk),
            in_specs=[
                pl.BlockSpec((bt, tq, H), lambda b, qi, ki: (b, qi, 0)),  # q
                pl.BlockSpec((bt, tk, H), lambda b, qi, ki: (b, ki, 0)),  # k
                pl.BlockSpec((bt, tk, H), lambda b, qi, ki: (b, ki, 0)),  # v
            ],
            out_specs=pl.BlockSpec((bt, tq, H), lambda b, qi, ki: (b, qi, 0)),
            scratch_shapes=[
                pltpu.VMEM((bt, tq, 1), jnp.float32),    # running max
                pltpu.VMEM((bt, tq, 1), jnp.float32),    # running denom
                pltpu.VMEM((bt, tq, H), jnp.float32),    # f32 accumulator
            ],
        ),
        compiler_params=pltpu.CompilerParams(
            dimension_semantics=("parallel", "parallel", "arbitrary")),
    )(q, k, v)

    # Only the ragged-S path carries any padding to strip.
    return out_p if Sp == S else out_p[:, :S, :]


# ---------------------------------------------------------------------------
# Pure-JAX reference (matches the PyTorch module)
# ---------------------------------------------------------------------------
def _reference(x, wq, wk, wv, bq, bk, bv):
    q = jnp.einsum("bsd,hd->bsh", x, wq) + bq
    k = jnp.einsum("bsd,hd->bsh", x, wk) + bk
    v = jnp.einsum("bsd,hd->bsh", x, wv) + bv
    w = jnp.einsum("bqh,bkh->bqk", q, k) / jnp.sqrt(jnp.float32(wq.shape[0]))
    w = jax.nn.softmax(w, axis=-1)
    return jnp.einsum("bqk,bkh->bqh", w, v)


def _make_params(key, d_in, h):
    kq, kk, kv, kbq, kbk, kbv = jax.random.split(key, 6)
    s = 1.0 / jnp.sqrt(jnp.float32(d_in))
    u = lambda k_, shp: jax.random.uniform(k_, shp, minval=-s, maxval=s,
                                           dtype=jnp.float32)
    return (u(kq, (h, d_in)), u(kk, (h, d_in)), u(kv, (h, d_in)),
            u(kbq, (h,)), u(kbk, (h,)), u(kbv, (h,)))


if __name__ == "__main__":
    key = jax.random.PRNGKey(0)
    k1, k2, k3, k4 = jax.random.split(key, 4)

    # ---- config 1: module's toy shapes (ragged S -> padded+masked path) ----
    B, S, D_IN, H = 2, 8, 32, 32
    x = jax.random.normal(k1, (B, S, D_IN), dtype=jnp.float32)
    wq, wk, wv, bq, bk, bv = _make_params(k2, D_IN, H)

    ref = _reference(x, wq, wk, wv, bq, bk, bv)
    out = jax.block_until_ready(self_attention(x, wq, wk, wv, bq, bk, bv))
    assert out.shape == (B, S, H)
    assert jnp.allclose(out, ref, atol=5e-3, rtol=5e-3), "f32 mismatch"

    # bf16 activations/weights (v6e/v7x MXU path); f32 accumulation inside.
    out_bf = jax.block_until_ready(
        self_attention(x.astype(jnp.bfloat16), wq, wk, wv, bq, bk, bv))
    assert jnp.allclose(out_bf.astype(jnp.float32), ref,
                        atol=5e-2, rtol=5e-2), "bf16 mismatch"

    # ---- config 2: lane-aligned H, S multiple of 128 (no pad / big tiles) ---
    B2, S2, D2, H2 = 2, 256, 64, 128
    x2 = jax.random.normal(k3, (B2, S2, D2), dtype=jnp.float32)
    wq2, wk2, wv2, bq2, bk2, bv2 = _make_params(k4, D2, H2)

    ref2 = _reference(x2, wq2, wk2, wv2, bq2, bk2, bv2)
    out2 = jax.block_until_ready(
        self_attention(x2, wq2, wk2, wv2, bq2, bk2, bv2))
    assert out2.shape == (B2, S2, H2)
    assert jnp.allclose(out2, ref2, atol=5e-3, rtol=5e-3), "aligned mismatch"

    print("KERNEL_OK")
</pallas_src>

<mosaic_0001>
module attributes {stable_mosaic.version = 11 : i64} {
  func.func @_qkv_proj_kernel(%arg0: i32, %arg1: memref<256x32xf32, #tpu.memory_space<vmem>>, %arg2: memref<32x32xf32, #tpu.memory_space<vmem>>, %arg3: memref<32x32xf32, #tpu.memory_space<vmem>>, %arg4: memref<32x32xf32, #tpu.memory_space<vmem>>, %arg5: memref<1x32xf32, #tpu.memory_space<vmem>>, %arg6: memref<1x32xf32, #tpu.memory_space<vmem>>, %arg7: memref<1x32xf32, #tpu.memory_space<vmem>>, %arg8: memref<256x32xf32, #tpu.memory_space<vmem>>, %arg9: memref<256x32xf32, #tpu.memory_space<vmem>>, %arg10: memref<256x32xf32, #tpu.memory_space<vmem>>) attributes {dimension_semantics = [#tpu.dimension_semantics<parallel>], iteration_bounds = array<i64: 1>, scalar_prefetch = 0 : i64, scratch_operands = 0 : i64, tpu.core_type = #tpu.core_type<tc>, window_params = [{transform_indices = @transform_0, window_bounds = array<i64: 256, 32>}, {pipeline_mode = #tpu.pipeline_mode<synchronous>, transform_indices = @transform_1, window_bounds = array<i64: 32, 32>}, {pipeline_mode = #tpu.pipeline_mode<synchronous>, transform_indices = @transform_2, window_bounds = array<i64: 32, 32>}, {pipeline_mode = #tpu.pipeline_mode<synchronous>, transform_indices = @transform_3, window_bounds = array<i64: 32, 32>}, {pipeline_mode = #tpu.pipeline_mode<synchronous>, transform_indices = @transform_4, window_bounds = array<i64: 1, 32>}, {pipeline_mode = #tpu.pipeline_mode<synchronous>, transform_indices = @transform_5, window_bounds = array<i64: 1, 32>}, {pipeline_mode = #tpu.pipeline_mode<synchronous>, transform_indices = @transform_6, window_bounds = array<i64: 1, 32>}, {transform_indices = @transform_7, window_bounds = array<i64: 256, 32>}, {transform_indices = @transform_8, window_bounds = array<i64: 256, 32>}, {transform_indices = @transform_9, window_bounds = array<i64: 256, 32>}]} {
    %c0 = arith.constant 0 : index
    %c0_0 = arith.constant 0 : index
    %0 = vector.load %arg1[%c0, %c0_0] : memref<256x32xf32, #tpu.memory_space<vmem>>, vector<256x32xf32>
    %c0_1 = arith.constant 0 : index
    %c0_2 = arith.constant 0 : index
    %1 = vector.load %arg2[%c0_1, %c0_2] : memref<32x32xf32, #tpu.memory_space<vmem>>, vector<32x32xf32>
    %cst = arith.constant dense<0.000000e+00> : vector<256x32xf32>
    %2 = tpu.matmul %0, %1, %cst {dimension_numbers = #tpu.dot_dimension_numbers<[1], [0], [0], [1], [0, 0, 1, 1], [], []>} : vector<256x32xf32>, vector<32x32xf32>, vector<256x32xf32> -> vector<256x32xf32>
    %c0_3 = arith.constant 0 : index
    %c0_4 = arith.constant 0 : index
    %3 = vector.load %arg5[%c0_3, %c0_4] : memref<1x32xf32, #tpu.memory_space<vmem>>, vector<1x32xf32>
    %4 = vector.broadcast %3 : vector<1x32xf32> to vector<256x32xf32>
    %5 = arith.addf %2, %4 : vector<256x32xf32>
    %c0_5 = arith.constant 0 : index
    %c0_6 = arith.constant 0 : index
    %6 = vector.load %arg8[%c0_5, %c0_6] : memref<256x32xf32, #tpu.memory_space<vmem>>, vector<256x32xf32>
    tpu.vector_store %arg8[%c0_5, %c0_6], %5 {strides = array<i32>} : memref<256x32xf32, #tpu.memory_space<vmem>>, vector<256x32xf32>,
    %c0_7 = arith.constant 0 : index
    %c0_8 = arith.constant 0 : index
    %7 = vector.load %arg3[%c0_7, %c0_8] : memref<32x32xf32, #tpu.memory_space<vmem>>, vector<32x32xf32>
    %cst_9 = arith.constant dense<0.000000e+00> : vector<256x32xf32>
    %8 = tpu.matmul %0, %7, %cst_9 {dimension_numbers = #tpu.dot_dimension_numbers<[1], [0], [0], [1], [0, 0, 1, 1], [], []>} : vector<256x32xf32>, vector<32x32xf32>, vector<256x32xf32> -> vector<256x32xf32>
    %c0_10 = arith.constant 0 : index
    %c0_11 = arith.constant 0 : index
    %9 = vector.load %arg6[%c0_10, %c0_11] : memref<1x32xf32, #tpu.memory_space<vmem>>, vector<1x32xf32>
    %10 = vector.broadcast %9 : vector<1x32xf32> to vector<256x32xf32>
    %11 = arith.addf %8, %10 : vector<256x32xf32>
    %c0_12 = arith.constant 0 : index
    %c0_13 = arith.constant 0 : index
    %12 = vector.load %arg9[%c0_12, %c0_13] : memref<256x32xf32, #tpu.memory_space<vmem>>, vector<256x32xf32>
    tpu.vector_store %arg9[%c0_12, %c0_13], %11 {strides = array<i32>} : memref<256x32xf32, #tpu.memory_space<vmem>>, vector<256x32xf32>,
    %c0_14 = arith.constant 0 : index
    %c0_15 = arith.constant 0 : index
    %13 = vector.load %arg4[%c0_14, %c0_15] : memref<32x32xf32, #tpu.memory_space<vmem>>, vector<32x32xf32>
    %cst_16 = arith.constant dense<0.000000e+00> : vector<256x32xf32>
    %14 = tpu.matmul %0, %13, %cst_16 {dimension_numbers = #tpu.dot_dimension_numbers<[1], [0], [0], [1], [0, 0, 1, 1], [], []>} : vector<256x32xf32>, vector<32x32xf32>, vector<256x32xf32> -> vector<256x32xf32>
    %c0_17 = arith.constant 0 : index
    %c0_18 = arith.constant 0 : index
    %15 = vector.load %arg7[%c0_17, %c0_18] : memref<1x32xf32, #tpu.memory_space<vmem>>, vector<1x32xf32>
    %16 = vector.broadcast %15 : vector<1x32xf32> to vector<256x32xf32>
    %17 = arith.addf %14, %16 : vector<256x32xf32>
    %c0_19 = arith.constant 0 : index
    %c0_20 = arith.constant 0 : index
    %18 = vector.load %arg10[%c0_19, %c0_20] : memref<256x32xf32, #tpu.memory_space<vmem>>, vector<256x32xf32>
    tpu.vector_store %arg10[%c0_19, %c0_20], %17 {strides = array<i32>} : memref<256x32xf32, #tpu.memory_space<vmem>>, vector<256x32xf32>,
    return
  }
  func.func @transform_0(%arg0: i32) -> (i32, i32) {
    %c0_i32 = arith.constant 0 : i32
    %c0_i32_0 = arith.constant 0 : i32
    return %arg0, %c0_i32 : i32, i32
  }
  func.func @transform_1(%arg0: i32) -> (i32, i32) {
    %c0_i32 = arith.constant 0 : i32
    %c0_i32_0 = arith.constant 0 : i32
    %c0_i32_1 = arith.constant 0 : i32
    return %c0_i32, %c0_i32_0 : i32, i32
  }
  func.func @transform_2(%arg0: i32) -> (i32, i32) {
    %c0_i32 = arith.constant 0 : i32
    %c0_i32_0 = arith.constant 0 : i32
    %c0_i32_1 = arith.constant 0 : i32
    return %c0_i32, %c0_i32_0 : i32, i32
  }
  func.func @transform_3(%arg0: i32) -> (i32, i32) {
    %c0_i32 = arith.constant 0 : i32
    %c0_i32_0 = arith.constant 0 : i32
    %c0_i32_1 = arith.constant 0 : i32
    return %c0_i32, %c0_i32_0 : i32, i32
  }
  func.func @transform_4(%arg0: i32) -> (i32, i32) {
    %c0_i32 = arith.constant 0 : i32
    %c0_i32_0 = arith.constant 0 : i32
    %c0_i32_1 = arith.constant 0 : i32
    return %c0_i32, %c0_i32_0 : i32, i32
  }
  func.func @transform_5(%arg0: i32) -> (i32, i32) {
    %c0_i32 = arith.constant 0 : i32
    %c0_i32_0 = arith.constant 0 : i32
    %c0_i32_1 = arith.constant 0 : i32
    return %c0_i32, %c0_i32_0 : i32, i32
  }
  func.func @transform_6(%arg0: i32) -> (i32, i32) {
    %c0_i32 = arith.constant 0 : i32
    %c0_i32_0 = arith.constant 0 : i32
    %c0_i32_1 = arith.constant 0 : i32
    return %c0_i32, %c0_i32_0 : i32, i32
  }
  func.func @transform_7(%arg0: i32) -> (i32, i32) {
    %c0_i32 = arith.constant 0 : i32
    %c0_i32_0 = arith.constant 0 : i32
    return %arg0, %c0_i32 : i32, i32
  }
  func.func @transform_8(%arg0: i32) -> (i32, i32) {
    %c0_i32 = arith.constant 0 : i32
    %c0_i32_0 = arith.constant 0 : i32
    return %arg0, %c0_i32 : i32, i32
  }
  func.func @transform_9(%arg0: i32) -> (i32, i32) {
    %c0_i32 = arith.constant 0 : i32
    %c0_i32_0 = arith.constant 0 : i32
    return %arg0, %c0_i32 : i32, i32
  }
}

module attributes {stable_mosaic.version = 11 : i64} {
  func.func @_flash_attn_kernel(%arg0: i32, %arg1: i32, %arg2: i32, %arg3: memref<1x128x32xf32, #tpu.memory_space<vmem>>, %arg4: memref<1x128x32xf32, #tpu.memory_space<vmem>>, %arg5: memref<1x128x32xf32, #tpu.memory_space<vmem>>, %arg6: memref<1x128x32xf32, #tpu.memory_space<vmem>>, %arg7: memref<1x128x1xf32, #tpu.memory_space<vmem>>, %arg8: memref<1x128x1xf32, #tpu.memory_space<vmem>>, %arg9: memref<1x128x32xf32, #tpu.memory_space<vmem>>) attributes {dimension_semantics = [#tpu.dimension_semantics<parallel>, #tpu.dimension_semantics<parallel>, #tpu.dimension_semantics<arbitrary>], iteration_bounds = array<i64: 2, 1, 1>, scalar_prefetch = 0 : i64, scratch_operands = 3 : i64, tpu.core_type = #tpu.core_type<tc>, window_params = [{transform_indices = @transform_0, window_bounds = array<i64: 1, 128, 32>}, {transform_indices = @transform_1, window_bounds = array<i64: 1, 128, 32>}, {transform_indices = @transform_2, window_bounds = array<i64: 1, 128, 32>}, {transform_indices = @transform_3, window_bounds = array<i64: 1, 128, 32>}]} {
    %c0_i32 = arith.constant 0 : i32
    %0 = arith.cmpi eq, %arg2, %c0_i32 : i32
    %1 = arith.extui %0 : i1 to i32
    %c0_i32_0 = arith.constant 0 : i32
    %2 = arith.cmpi ne, %1, %c0_i32_0 : i32
    scf.if %2 {
      %cst_33 = arith.constant 0xFF800000 : f32
      %40 = vector.broadcast %cst_33 : f32 to vector<1x128x1xf32>
      %c0_34 = arith.constant 0 : index
      %c0_35 = arith.constant 0 : index
      %c0_36 = arith.constant 0 : index
      %41 = vector.load %arg7[%c0_34, %c0_35, %c0_36] : memref<1x128x1xf32, #tpu.memory_space<vmem>>, vector<1x128x1xf32>
      tpu.vector_store %arg7[%c0_34, %c0_35, %c0_36], %40 {strides = array<i32>} : memref<1x128x1xf32, #tpu.memory_space<vmem>>, vector<1x128x1xf32>,
      %cst_37 = arith.constant 0.000000e+00 : f32
      %42 = vector.broadcast %cst_37 : f32 to vector<1x128x1xf32>
      %c0_38 = arith.constant 0 : index
      %c0_39 = arith.constant 0 : index
      %c0_40 = arith.constant 0 : index
      %43 = vector.load %arg8[%c0_38, %c0_39, %c0_40] : memref<1x128x1xf32, #tpu.memory_space<vmem>>, vector<1x128x1xf32>
      tpu.vector_store %arg8[%c0_38, %c0_39, %c0_40], %42 {strides = array<i32>} : memref<1x128x1xf32, #tpu.memory_space<vmem>>, vector<1x128x1xf32>,
      %cst_41 = arith.constant 0.000000e+00 : f32
      %44 = vector.broadcast %cst_41 : f32 to vector<1x128x32xf32>
      %c0_42 = arith.constant 0 : index
      %c0_43 = arith.constant 0 : index
      %c0_44 = arith.constant 0 : index
      %45 = vector.load %arg9[%c0_42, %c0_43, %c0_44] : memref<1x128x32xf32, #tpu.memory_space<vmem>>, vector<1x128x32xf32>
      tpu.vector_store %arg9[%c0_42, %c0_43, %c0_44], %44 {strides = array<i32>} : memref<1x128x32xf32, #tpu.memory_space<vmem>>, vector<1x128x32xf32>,
    } else {
    }
    %c0 = arith.constant 0 : index
    %c0_1 = arith.constant 0 : index
    %c0_2 = arith.constant 0 : index
    %3 = vector.load %arg3[%c0, %c0_1, %c0_2] : memref<1x128x32xf32, #tpu.memory_space<vmem>>, vector<1x128x32xf32>
    %c0_3 = arith.constant 0 : index
    %c0_4 = arith.constant 0 : index
    %c0_5 = arith.constant 0 : index
    %4 = vector.load %arg4[%c0_3, %c0_4, %c0_5] : memref<1x128x32xf32, #tpu.memory_space<vmem>>, vector<1x128x32xf32>
    "tpu.trace_start"() <{level = 10 : i32, message = "bqd,bkd->bqk"}> : () -> ()
    %cst = arith.constant dense<0.000000e+00> : vector<1x128x128xf32>
    %5 = tpu.matmul %3, %4, %cst {dimension_numbers = #tpu.dot_dimension_numbers<[2], [2], [1], [1], [0, 0, 0, 1, 1, 1], [0], [0]>} : vector<1x128x32xf32>, vector<1x128x32xf32>, vector<1x128x128xf32> -> vector<1x128x128xf32>
    "tpu.trace_stop"() : () -> ()
    %c128_i32 = arith.constant 128 : i32
    %6 = arith.muli %arg2, %c128_i32 : i32
    %7 = tpu.iota {dimensions = array<i32: 2>} : vector<1x128x128xi32>
    %8 = vector.broadcast %6 : i32 to vector<1x128x128xi32>
    %9 = arith.addi %8, %7 : vector<1x128x128xi32>
    %c8_i32 = arith.constant 8 : i32
    %10 = vector.broadcast %c8_i32 : i32 to vector<1x128x128xi32>
    %11 = arith.cmpi slt, %9, %10 : vector<1x128x128xi32>
    %cst_6 = arith.constant 0xFF800000 : f32
    %12 = vector.broadcast %cst_6 : f32 to vector<1x128x128xf32>
    %13 = arith.select %11, %5, %12 : vector<1x128x128xi1>, vector<1x128x128xf32>
    %c0_7 = arith.constant 0 : index
    %c0_8 = arith.constant 0 : index
    %c0_9 = arith.constant 0 : index
    %14 = vector.load %arg7[%c0_7, %c0_8, %c0_9] : memref<1x128x1xf32, #tpu.memory_space<vmem>>, vector<1x128x1xf32>
    %cst_10 = arith.constant dense<0xFF800000> : vector<1x128xf32>
    %15 = vector.multi_reduction <maximumf>, %13, %cst_10 [2] : vector<1x128x128xf32> to vector<1x128xf32>
    %16 = vector.shape_cast %15 : vector<1x128xf32> to vector<1x128x1xf32>
    %17 = arith.maximumf %14, %16 : vector<1x128x1xf32>
    %18 = arith.subf %14, %17 : vector<1x128x1xf32>
    %19 = math.exp %18 : vector<1x128x1xf32>
    %20 = vector.broadcast %17 : vector<1x128x1xf32> to vector<1x128x128xf32>
    %21 = arith.subf %13, %20 : vector<1x128x128xf32>
    %22 = math.exp %21 : vector<1x128x128xf32>
    %c0_11 = arith.constant 0 : index
    %c0_12 = arith.constant 0 : index
    %c0_13 = arith.constant 0 : index
    %23 = vector.load %arg8[%c0_11, %c0_12, %c0_13] : memref<1x128x1xf32, #tpu.memory_space<vmem>>, vector<1x128x1xf32>
    %24 = arith.mulf %19, %23 : vector<1x128x1xf32>
    %cst_14 = arith.constant dense<0.000000e+00> : vector<1x128xf32>
    %25 = vector.multi_reduction <add>, %22, %cst_14 [2] : vector<1x128x128xf32> to vector<1x128xf32>
    %26 = vector.shape_cast %25 : vector<1x128xf32> to vector<1x128x1xf32>
    %27 = arith.addf %24, %26 : vector<1x128x1xf32>
    %c0_15 = arith.constant 0 : index
    %c0_16 = arith.constant 0 : index
    %c0_17 = arith.constant 0 : index
    %28 = vector.load %arg8[%c0_15, %c0_16, %c0_17] : memref<1x128x1xf32, #tpu.memory_space<vmem>>, vector<1x128x1xf32>
    tpu.vector_store %arg8[%c0_15, %c0_16, %c0_17], %27 {strides = array<i32>} : memref<1x128x1xf32, #tpu.memory_space<vmem>>, vector<1x128x1xf32>,
    %c0_18 = arith.constant 0 : index
    %c0_19 = arith.constant 0 : index
    %c0_20 = arith.constant 0 : index
    %29 = vector.load %arg9[%c0_18, %c0_19, %c0_20] : memref<1x128x32xf32, #tpu.memory_space<vmem>>, vector<1x128x32xf32>
    %30 = vector.broadcast %19 : vector<1x128x1xf32> to vector<1x128x32xf32>
    %31 = arith.mulf %30, %29 : vector<1x128x32xf32>
    %c0_21 = arith.constant 0 : index
    %c0_22 = arith.constant 0 : index
    %c0_23 = arith.constant 0 : index
    %32 = vector.load %arg5[%c0_21, %c0_22, %c0_23] : memref<1x128x32xf32, #tpu.memory_space<vmem>>, vector<1x128x32xf32>
    "tpu.trace_start"() <{level = 10 : i32, message = "bqk,bkd->bqd"}> : () -> ()
    %cst_24 = arith.constant dense<0.000000e+00> : vector<1x128x32xf32>
    %33 = tpu.matmul %22, %32, %cst_24 {dimension_numbers = #tpu.dot_dimension_numbers<[2], [1], [1], [2], [0, 0, 0, 1, 1, 2], [0], [0]>} : vector<1x128x128xf32>, vector<1x128x32xf32>, vector<1x128x32xf32> -> vector<1x128x32xf32>
    "tpu.trace_stop"() : () -> ()
    %34 = arith.addf %31, %33 : vector<1x128x32xf32>
    %c0_25 = arith.constant 0 : index
    %c0_26 = arith.constant 0 : index
    %c0_27 = arith.constant 0 : index
    %35 = vector.load %arg9[%c0_25, %c0_26, %c0_27] : memref<1x128x32xf32, #tpu.memory_space<vmem>>, vector<1x128x32xf32>
    tpu.vector_store %arg9[%c0_25, %c0_26, %c0_27], %34 {strides = array<i32>} : memref<1x128x32xf32, #tpu.memory_space<vmem>>, vector<1x128x32xf32>,
    %c0_28 = arith.constant 0 : index
    %c0_29 = arith.constant 0 : index
    %c0_30 = arith.constant 0 : index
    %36 = vector.load %arg7[%c0_28, %c0_29, %c0_30] : memref<1x128x1xf32, #tpu.memory_space<vmem>>, vector<1x128x1xf32>
    tpu.vector_store %arg7[%c0_28, %c0_29, %c0_30], %17 {strides = array<i32>} : memref<1x128x1xf32, #tpu.memory_space<vmem>>, vector<1x128x1xf32>,
    %c0_i32_31 = arith.constant 0 : i32
    %37 = arith.cmpi eq, %arg2, %c0_i32_31 : i32
    %38 = arith.extui %37 : i1 to i32
    %c0_i32_32 = arith.constant 0 : i32
    %39 = arith.cmpi ne, %38, %c0_i32_32 : i32
    scf.if %39 {
      %c0_33 = arith.constant 0 : index
      %c0_34 = arith.constant 0 : index
      %c0_35 = arith.constant 0 : index
      %40 = vector.load %arg8[%c0_33, %c0_34, %c0_35] : memref<1x128x1xf32, #tpu.memory_space<vmem>>, vector<1x128x1xf32>
      %41 = tpu.reciprocal %40 {approx = true} : vector<1x128x1xf32> -> vector<1x128x1xf32>
      %c0_36 = arith.constant 0 : index
      %c0_37 = arith.constant 0 : index
      %c0_38 = arith.constant 0 : index
      %42 = vector.load %arg9[%c0_36, %c0_37, %c0_38] : memref<1x128x32xf32, #tpu.memory_space<vmem>>, vector<1x128x32xf32>
      %43 = vector.broadcast %41 : vector<1x128x1xf32> to vector<1x128x32xf32>
      %44 = arith.mulf %42, %43 : vector<1x128x32xf32>
      %c0_39 = arith.constant 0 : index
      %c0_40 = arith.constant 0 : index
      %c0_41 = arith.constant 0 : index
      %45 = vector.load %arg6[%c0_39, %c0_40, %c0_41] : memref<1x128x32xf32, #tpu.memory_space<vmem>>, vector<1x128x32xf32>
      tpu.vector_store %arg6[%c0_39, %c0_40, %c0_41], %44 {strides = array<i32>} : memref<1x128x32xf32, #tpu.memory_space<vmem>>, vector<1x128x32xf32>,
    } else {
    }
    return
  }
  func.func @transform_0(%arg0: i32, %arg1: i32, %arg2: i32) -> (i32, i32, i32) {
    %c0_i32 = arith.constant 0 : i32
    %c0_i32_0 = arith.constant 0 : i32
    return %arg0, %arg1, %c0_i32 : i32, i32, i32
  }
  func.func @transform_1(%arg0: i32, %arg1: i32, %arg2: i32) -> (i32, i32, i32) {
    %c0_i32 = arith.constant 0 : i32
    %c0_i32_0 = arith.constant 0 : i32
    return %arg0, %arg2, %c0_i32 : i32, i32, i32
  }
  func.func @transform_2(%arg0: i32, %arg1: i32, %arg2: i32) -> (i32, i32, i32) {
    %c0_i32 = arith.constant 0 : i32
    %c0_i32_0 = arith.constant 0 : i32
    return %arg0, %arg2, %c0_i32 : i32, i32, i32
  }
  func.func @transform_3(%arg0: i32, %arg1: i32, %arg2: i32) -> (i32, i32, i32) {
    %c0_i32 = arith.constant 0 : i32
    %c0_i32_0 = arith.constant 0 : i32
    return %arg0, %arg1, %c0_i32 : i32, i32, i32
  }
}

</mosaic_0001>

<bundles_post_ra>
// kernel: self_attention.2
= control target key start
LH: loop header
LB: loop body
LE: loop exit
PB: predicated region body
PF: predicated region fallthrough
CT: control target
= control target key end

     0   :  { %vm69_vm0 = vcmask 261120   ;;  %s1553_s1 = inlined_call_operand.vmem [shape: f32[32,32], index: 1, kind: input, shape index: {}]   ;;  %s1554_s3 = inlined_call_operand.vmem [shape: f32[32,32], index: 3, kind: input, shape index: {}]   ;;  %s1555_s2 = inlined_call_operand.vmem [shape: f32[32,32], index: 2, kind: input, shape index: {}]   ;;  %s1556_s0 = inlined_call_operand.vmem [shape: f32[256,32], index: 0, kind: input, shape index: {}]   ;;  %s1557_s4 = inlined_call_operand.vmem [shape: f32[1,32], index: 4, kind: input, shape index: {}]   ;;  %s1558_s5 = inlined_call_operand.vmem [shape: f32[1,32], index: 5, kind: input, shape index: {}]   ;;  %s1559_s6 = inlined_call_operand.vmem [shape: f32[1,32], index: 6, kind: input, shape index: {}]   ;;  %s1560_s7 = inlined_call_operand.vmem [shape: f32[256,32], index: 7, kind: output, shape index: {0}]   ;;  %s1561_s8 = inlined_call_operand.vmem [shape: f32[256,32], index: 8, kind: output, shape index: {1}]   ;;  %s1562_s9 = inlined_call_operand.vmem [shape: f32[256,32], index: 9, kind: output, shape index: {2}]  }
   0x1   :  { %v64_v0 = vld [vmem:[%s1553_s1 + $0x18] sm:$0xff]  ;;  %v63_v2 = vld [vmem:[%s1553_s1 + $0x10] sm:$0xff]  ;;  %v62_v4 = vld [vmem:[%s1553_s1 + $0x8] sm:$0xff] }
   0x2   :  { %v467_v1 = vld [vmem:[%s1554_s3 + $0x18] sm:$0xff]  ;;  %725 = vmatpush.msra.mxu3 %v64_v0  ;;  %v466_v3 = vld [vmem:[%s1554_s3 + $0x10] sm:$0xff]  ;;  %v465_v5 = vld [vmem:[%s1554_s3 + $0x8] sm:$0xff]  ;;  %178 = vmatpush.msra.mxu0 %v64_v0 }
   0x3   :  { %484 = vmatpush.msra.mxu2 %v467_v1  ;;  %v314_v6 = vld [vmem:[%s1555_s2 + $0x18] sm:$0xff]  ;;  %v313_v7 = vld [vmem:[%s1555_s2 + $0x10] sm:$0xff]  ;;  %v61_v8 = vld [vmem:[%s1553_s1] sm:$0xff] }
   0x4   :  { %726 = vmatpush.msra.mxu3 %v63_v2  ;;  %331 = vmatpush.msra.mxu1 %v314_v6  ;;  %v464_v9 = vld [vmem:[%s1554_s3] sm:$0xff]  ;;  %v312_v12 = vld [vmem:[%s1555_s2 + $0x8] sm:$0xff]  ;;  %v855_v16 = vld [vmem:[%s1556_s0 + $0xd0] sm:$0xff] }
   0x5   :  { %485 = vmatpush.msra.mxu2 %v466_v3  ;;  %179 = vmatpush.msra.mxu0 %v63_v2  ;;  %v823_v10 = vld [vmem:[%s1556_s0 + $0xc0] sm:$0xff]  ;;  %v842_v14 = vld [vmem:[%s1556_s0 + $0xc8] sm:$0xff]  ;;  %v31_v17 = vld [vmem:[%s1556_s0 + $0x10] sm:$0xff] }
   0x6   :  { %727 = vmatpush.msra.mxu3 %v62_v4  ;;  %v29_v11 = vld [vmem:[%s1556_s0] sm:$0xff]  ;;  %332 = vmatpush.msra.mxu1 %v313_v7  ;;  %v30_v15 = vld [vmem:[%s1556_s0 + $0x8] sm:$0xff]  ;;  %v868_v18 = vld [vmem:[%s1556_s0 + $0xd8] sm:$0xff] }
   0x7   :  { %486 = vmatpush.msra.mxu2 %v465_v5  ;;  %180 = vmatpush.msra.mxu0 %v62_v4  ;;  %v311_v13 = vld [vmem:[%s1555_s2] sm:$0xff]  ;;  %v32_v19 = vld [vmem:[%s1556_s0 + $0x18] sm:$0xff]  ;;  %v894_v22 = vld [vmem:[%s1556_s0 + $0xe8] sm:$0xff] }
   0x8   :  { %728 = vmatpush.msra.mxu3 %v61_v8  ;;  %333 = vmatpush.msra.mxu1 %v312_v12  ;;  %v881_v20 = vld [vmem:[%s1556_s0 + $0xe0] sm:$0xff]  ;;  %v34_v23 = vld [vmem:[%s1556_s0 + $0x28] sm:$0xff]  ;;  %v907_v24 = vld [vmem:[%s1556_s0 + $0xf0] sm:$0xff] }
   0x9   :  { %487 = vmatpush.msra.mxu2 %v464_v9  ;;  %653 = vmatmul.msk.f32.vlgmr.msra.gmra.mxu3 %vm69_vm0, %v823_v10  ;;  %v33_v21 = vld [vmem:[%s1556_s0 + $0x20] sm:$0xff]  ;;  %v35_v25 = vld [vmem:[%s1556_s0 + $0x30] sm:$0xff]  ;;  %v920_v26 = vld [vmem:[%s1556_s0 + $0xf8] sm:$0xff] }
   0xa   :  { %693 = vmatmul.msk.f32.vlgmr.msra.gmra.mxu2 %vm69_vm0, %v29_v11  ;;  %729 = vmatpush.msrb.mxu3 %v314_v6  ;;  %v36_v27 = vld [vmem:[%s1556_s0 + $0x38] sm:$0xff]  ;;  %v37_v28 = vld [vmem:[%s1556_s0 + $0x40] sm:$0xff]  ;;  %v38_v29 = vld [vmem:[%s1556_s0 + $0x48] sm:$0xff] }
   0xb   :  { %181 = vmatpush.msra.mxu0 %v61_v8  ;;  %334 = vmatpush.msra.mxu1 %v311_v13  ;;  %v39_v30 = vld [vmem:[%s1556_s0 + $0x50] sm:$0xff]  ;;  %v40_v31 = vld [vmem:[%s1556_s0 + $0x58] sm:$0xff]  ;;  %v41_v32 = vld [vmem:[%s1556_s0 + $0x60] sm:$0xff] }
   0xc   :  { %629 = vmatmul.msk.f32.vlgmr.msra.gmra.mxu0 %vm69_vm0, %v29_v11  ;;  %661 = vmatmul.msk.f32.vlgmr.msra.gmra.mxu1 %vm69_vm0, %v29_v11  ;;  %v42_v33 = vld [vmem:[%s1556_s0 + $0x68] sm:$0xff]  ;;  %v43_v34 = vld [vmem:[%s1556_s0 + $0x70] sm:$0xff]  ;;  %v44_v35 = vld [vmem:[%s1556_s0 + $0x78] sm:$0xff] }
   0xd   :  { %730 = vmatpush.msrb.mxu3 %v313_v7  ;;  %v45_v36 = vld [vmem:[%s1556_s0 + $0x80] sm:$0xff]  ;;  %v46_v48 = vld [vmem:[%s1556_s0 + $0x88] sm:$0xff]  ;;  %v47_v57 = vld [vmem:[%s1556_s0 + $0x90] sm:$0xff] }
   0xe   :  { %v1000_v37 = vld [vmem:[%s1557_s4] ss:$0 sm:$0xff]  ;;  %v48_v2 = vld [vmem:[%s1556_s0 + $0x98] sm:$0xff] }
   0xf   :  { %731 = vmatpush.msrb.mxu3 %v312_v12  ;;  %v1005_v38 = vld [vmem:[%s1558_s5] ss:$0 sm:$0xff] }
  0x10   :  { %v1013_v40 = vld [vmem:[%s1559_s6] ss:$0 sm:$0xff] }
  0x11   :  { %654 = vmatmul.msk.f32.gmra.mxu3 %vm69_vm0, %v842_v14  ;;  %v49_v11 = vld [vmem:[%s1556_s0 + $0xa0] sm:$0xff] }
  0x12   :  { %694 = vmatmul.msk.f32.gmra.mxu2 %vm69_vm0, %v30_v15  ;;  %732 = vmatpush.msrb.mxu3 %v311_v13 }
  0x14   :  { %733 = vmatpush.msra.mxu3 %v467_v1  ;;  %630 = vmatmul.msk.f32.gmra.mxu0 %vm69_vm0, %v30_v15 }
  0x15   :  { %662 = vmatmul.msk.f32.gmra.mxu1 %vm69_vm0, %v30_v15 }
  0x16   :  { %734 = vmatpush.msra.mxu3 %v466_v3 }
  0x18   :  { %735 = vmatpush.msra.mxu3 %v465_v5 }
  0x19   :  { %655 = vmatmul.msk.f32.gmra.mxu3 %vm69_vm0, %v855_v16 }
  0x1a   :  { %695 = vmatmul.msk.f32.gmra.mxu2 %vm69_vm0, %v31_v17  ;;  %736 = vmatpush.msra.mxu3 %v464_v9 }
  0x1c   :  { %631 = vmatmul.msk.f32.gmra.mxu0 %vm69_vm0, %v31_v17 }
  0x1d   :  { %663 = vmatmul.msk.f32.gmra.mxu1 %vm69_vm0, %v31_v17 }
  0x21   :  { %656 = vmatmul.msk.f32.gmra.mxu3 %vm69_vm0, %v868_v18 }
  0x22   :  { %696 = vmatmul.msk.f32.gmra.mxu2 %vm69_vm0, %v32_v19 }
  0x24   :  { %632 = vmatmul.msk.f32.gmra.mxu0 %vm69_vm0, %v32_v19 }
  0x25   :  { %664 = vmatmul.msk.f32.gmra.mxu1 %vm69_vm0, %v32_v19 }
  0x29   :  { %657 = vmatmul.msk.f32.gmra.mxu3 %vm69_vm0, %v881_v20 }
  0x2a   :  { %697 = vmatmul.msk.f32.gmra.mxu2 %vm69_vm0, %v33_v21 }
  0x2c   :  { %633 = vmatmul.msk.f32.gmra.mxu0 %vm69_vm0, %v33_v21 }
  0x2d   :  { %665 = vmatmul.msk.f32.gmra.mxu1 %vm69_vm0, %v33_v21 }
  0x31   :  { %658 = vmatmul.msk.f32.gmra.mxu3 %vm69_vm0, %v894_v22 }
  0x32   :  { %698 = vmatmul.msk.f32.gmra.mxu2 %vm69_vm0, %v34_v23 }
  0x34   :  { %634 = vmatmul.msk.f32.gmra.mxu0 %vm69_vm0, %v34_v23 }
  0x35   :  { %666 = vmatmul.msk.f32.gmra.mxu1 %vm69_vm0, %v34_v23 }
  0x39   :  { %659 = vmatmul.msk.f32.gmra.mxu3 %vm69_vm0, %v907_v24 }
  0x3a   :  { %699 = vmatmul.msk.f32.gmra.mxu2 %vm69_vm0, %v35_v25 }
  0x3c   :  { %635 = vmatmul.msk.f32.gmra.mxu0 %vm69_vm0, %v35_v25 }
  0x3d   :  { %667 = vmatmul.msk.f32.gmra.mxu1 %vm69_vm0, %v35_v25 }
  0x41   :  { %660 = vmatmul.msk.f32.gmra.mxu3 %vm69_vm0, %v920_v26 }
  0x42   :  { %700 = vmatmul.msk.f32.gmra.mxu2 %vm69_vm0, %v36_v27 }
  0x44   :  { %636 = vmatmul.msk.f32.gmra.mxu0 %vm69_vm0, %v36_v27 }
  0x45   :  { %668 = vmatmul.msk.f32.gmra.mxu1 %vm69_vm0, %v36_v27 }
  0x49   :  { %685 = vmatmul.msk.f32.vlgmr.msrb.gmra.mxu3 %vm69_vm0, %v823_v10 }
  0x4a   :  { %701 = vmatmul.msk.f32.gmra.mxu2 %vm69_vm0, %v37_v28 }
  0x4c   :  { %637 = vmatmul.msk.f32.gmra.mxu0 %vm69_vm0, %v37_v28 }
  0x4d   :  { %669 = vmatmul.msk.f32.gmra.mxu1 %vm69_vm0, %v37_v28 }
  0x51   :  { %686 = vmatmul.msk.f32.gmra.mxu3 %vm69_vm0, %v842_v14 }
  0x52   :  { %702 = vmatmul.msk.f32.gmra.mxu2 %vm69_vm0, %v38_v29 }
  0x54   :  { %638 = vmatmul.msk.f32.gmra.mxu0 %vm69_vm0, %v38_v29 }
  0x55   :  { %670 = vmatmul.msk.f32.gmra.mxu1 %vm69_vm0, %v38_v29 }
  0x59   :  { %687 = vmatmul.msk.f32.gmra.mxu3 %vm69_vm0, %v855_v16 }
  0x5a   :  { %703 = vmatmul.msk.f32.gmra.mxu2 %vm69_vm0, %v39_v30 }
  0x5c   :  { %639 = vmatmul.msk.f32.gmra.mxu0 %vm69_vm0, %v39_v30 }
  0x5d   :  { %671 = vmatmul.msk.f32.gmra.mxu1 %vm69_vm0, %v39_v30 }
  0x61   :  { %688 = vmatmul.msk.f32.gmra.mxu3 %vm69_vm0, %v868_v18 }
  0x62   :  { %704 = vmatmul.msk.f32.gmra.mxu2 %vm69_vm0, %v40_v31 }
  0x64   :  { %640 = vmatmul.msk.f32.gmra.mxu0 %vm69_vm0, %v40_v31 }
  0x65   :  { %672 = vmatmul.msk.f32.gmra.mxu1 %vm69_vm0, %v40_v31  ;;  %v51_v31 = vld [vmem:[%s1556_s0 + $0xb0] sm:$0xff] }
  0x69   :  { %689 = vmatmul.msk.f32.gmra.mxu3 %vm69_vm0, %v881_v20 }
  0x6a   :  { %705 = vmatmul.msk.f32.gmra.mxu2 %vm69_vm0, %v41_v32 }
  0x6c   :  { %641 = vmatmul.msk.f32.gmra.mxu0 %vm69_vm0, %v41_v32 }
  0x6d   :  { %673 = vmatmul.msk.f32.gmra.mxu1 %vm69_vm0, %v41_v32 }
  0x71   :  { %690 = vmatmul.msk.f32.gmra.mxu3 %vm69_vm0, %v894_v22 }
  0x72   :  { %706 = vmatmul.msk.f32.gmra.mxu2 %vm69_vm0, %v42_v33 }
  0x74   :  { %642 = vmatmul.msk.f32.gmra.mxu0 %vm69_vm0, %v42_v33 }
  0x75   :  { %674 = vmatmul.msk.f32.gmra.mxu1 %vm69_vm0, %v42_v33 }
  0x79   :  { %691 = vmatmul.msk.f32.gmra.mxu3 %vm69_vm0, %v907_v24 }
  0x7a   :  { %707 = vmatmul.msk.f32.gmra.mxu2 %vm69_vm0, %v43_v34 }
  0x7c   :  { %643 = vmatmul.msk.f32.gmra.mxu0 %vm69_vm0, %v43_v34 }
  0x7d   :  { %675 = vmatmul.msk.f32.gmra.mxu1 %vm69_vm0, %v43_v34 }
  0x81   :  { %692 = vmatmul.msk.f32.gmra.mxu3 %vm69_vm0, %v920_v26 }
  0x82   :  { %708 = vmatmul.msk.f32.gmra.mxu2 %vm69_vm0, %v44_v35 }
  0x84   :  { %644 = vmatmul.msk.f32.gmra.mxu0 %vm69_vm0, %v44_v35 }
  0x85   :  { %676 = vmatmul.msk.f32.gmra.mxu1 %vm69_vm0, %v44_v35 }
  0x89   :  { %717 = vmatmul.msk.f32.vlgmr.msra.gmra.mxu3 %vm69_vm0, %v823_v10  ;;  %v183_v39 = vpop.f32.mrf.mxu0  ;;  %v336_v42 = vpop.f32.mrf.mxu1 }
  0x8a   :  { %709 = vmatmul.msk.f32.gmra.mxu2 %vm69_vm0, %v45_v36  ;;  %v184_v41 = vadd.f32 %v1000_v37, %v183_v39  ;;  %v337_v43 = vadd.f32 %v1005_v38, %v336_v42  ;;  %v52_v42 = vld [vmem:[%s1556_s0 + $0xb8] sm:$0xff] }
  0x8c   :  { %279 = vst.msk [vmem:[%s1560_s7] sm:$0xff] %vm69_vm0, %v184_v41  ;;  %v255_v44 = vpop.f32.mrf.mxu3  ;;  %645 = vmatmul.msk.f32.gmra.mxu0 %vm69_vm0, %v45_v36 }
  0x8d   :  { %v489_v45 = vpop.f32.mrf.mxu2  ;;  %v256_v46 = vadd.f32 %v1000_v37, %v255_v44  ;;  %432 = vst.msk [vmem:[%s1561_s8] sm:$0xff] %vm69_vm0, %v337_v43  ;;  %677 = vmatmul.msk.f32.gmra.mxu1 %vm69_vm0, %v45_v36 }
  0x8e   :  { %v490_v47 = vadd.f32 %v1013_v40, %v489_v45 }
  0x8f   :  { %303 = vst.msk [vmem:[%s1560_s7 + $0xc0] sm:$0xff] %vm69_vm0, %v256_v46 }
  0x90   :  { %585 = vst.msk [vmem:[%s1562_s9] sm:$0xff] %vm69_vm0, %v490_v47 }
  0x91   :  { %718 = vmatmul.msk.f32.gmra.mxu3 %vm69_vm0, %v842_v14  ;;  %v186_v49 = vpop.f32.mrf.mxu0 }
  0x92   :  { %710 = vmatmul.msk.f32.gmra.mxu2 %vm69_vm0, %v46_v48  ;;  %v187_v50 = vadd.f32 %v1000_v37, %v186_v49  ;;  %v339_v51 = vpop.f32.mrf.mxu1 }
  0x93   :  { %v340_v52 = vadd.f32 %v1005_v38, %v339_v51 }
  0x94   :  { %280 = vst.msk [vmem:[%s1560_s7 + $0x8] sm:$0xff] %vm69_vm0, %v187_v50  ;;  %v258_v53 = vpop.f32.mrf.mxu3  ;;  %646 = vmatmul.msk.f32.gmra.mxu0 %vm69_vm0, %v46_v48 }
  0x95   :  { %v492_v54 = vpop.f32.mrf.mxu2  ;;  %v259_v55 = vadd.f32 %v1000_v37, %v258_v53  ;;  %433 = vst.msk [vmem:[%s1561_s8 + $0x8] sm:$0xff] %vm69_vm0, %v340_v52  ;;  %678 = vmatmul.msk.f32.gmra.mxu1 %vm69_vm0, %v46_v48 }
  0x96   :  { %v493_v56 = vadd.f32 %v1013_v40, %v492_v54 }
  0x97   :  { %304 = vst.msk [vmem:[%s1560_s7 + $0xc8] sm:$0xff] %vm69_vm0, %v259_v55 }
  0x98   :  { %586 = vst.msk [vmem:[%s1562_s9 + $0x8] sm:$0xff] %vm69_vm0, %v493_v56 }
  0x99   :  { %719 = vmatmul.msk.f32.gmra.mxu3 %vm69_vm0, %v855_v16  ;;  %v189_v58 = vpop.f32.mrf.mxu0 }
  0x9a   :  { %711 = vmatmul.msk.f32.gmra.mxu2 %vm69_vm0, %v47_v57  ;;  %v190_v59 = vadd.f32 %v1000_v37, %v189_v58  ;;  %v342_v60 = vpop.f32.mrf.mxu1 }
  0x9b   :  { %v343_v61 = vadd.f32 %v1005_v38, %v342_v60 }
  0x9c   :  { %281 = vst.msk [vmem:[%s1560_s7 + $0x10] sm:$0xff] %vm69_vm0, %v190_v59  ;;  %v261_v62 = vpop.f32.mrf.mxu3  ;;  %647 = vmatmul.msk.f32.gmra.mxu0 %vm69_vm0, %v47_v57 }
  0x9d   :  { %v495_v63 = vpop.f32.mrf.mxu2  ;;  %v262_v0 = vadd.f32 %v1000_v37, %v261_v62  ;;  %434 = vst.msk [vmem:[%s1561_s8 + $0x10] sm:$0xff] %vm69_vm0, %v343_v61  ;;  %679 = vmatmul.msk.f32.gmra.mxu1 %vm69_vm0, %v47_v57 }
  0x9e   :  { %v496_v1 = vadd.f32 %v1013_v40, %v495_v63 }
  0x9f   :  { %305 = vst.msk [vmem:[%s1560_s7 + $0xd0] sm:$0xff] %vm69_vm0, %v262_v0 }
  0xa0   :  { %587 = vst.msk [vmem:[%s1562_s9 + $0x10] sm:$0xff] %vm69_vm0, %v496_v1 }
  0xa1   :  { %720 = vmatmul.msk.f32.gmra.mxu3 %vm69_vm0, %v868_v18  ;;  %v192_v3 = vpop.f32.mrf.mxu0 }
  0xa2   :  { %712 = vmatmul.msk.f32.gmra.mxu2 %vm69_vm0, %v48_v2  ;;  %v193_v4 = vadd.f32 %v1000_v37, %v192_v3  ;;  %v345_v5 = vpop.f32.mrf.mxu1 }
  0xa3   :  { %v346_v6 = vadd.f32 %v1005_v38, %v345_v5 }
  0xa4   :  { %282 = vst.msk [vmem:[%s1560_s7 + $0x18] sm:$0xff] %vm69_vm0, %v193_v4  ;;  %v264_v7 = vpop.f32.mrf.mxu3  ;;  %648 = vmatmul.msk.f32.gmra.mxu0 %vm69_vm0, %v48_v2 }
  0xa5   :  { %v498_v8 = vpop.f32.mrf.mxu2  ;;  %v265_v9 = vadd.f32 %v1000_v37, %v264_v7  ;;  %435 = vst.msk [vmem:[%s1561_s8 + $0x18] sm:$0xff] %vm69_vm0, %v346_v6  ;;  %680 = vmatmul.msk.f32.gmra.mxu1 %vm69_vm0, %v48_v2 }
  0xa6   :  { %v499_v10 = vadd.f32 %v1013_v40, %v498_v8 }
  0xa7   :  { %306 = vst.msk [vmem:[%s1560_s7 + $0xd8] sm:$0xff] %vm69_vm0, %v265_v9 }
  0xa8   :  { %588 = vst.msk [vmem:[%s1562_s9 + $0x18] sm:$0xff] %vm69_vm0, %v499_v10 }
  0xa9   :  { %721 = vmatmul.msk.f32.gmra.mxu3 %vm69_vm0, %v881_v20  ;;  %v195_v12 = vpop.f32.mrf.mxu0  ;;  %v50_v20 = vld [vmem:[%s1556_s0 + $0xa8] sm:$0xff] }
  0xaa   :  { %713 = vmatmul.msk.f32.gmra.mxu2 %vm69_vm0, %v49_v11  ;;  %v196_v13 = vadd.f32 %v1000_v37, %v195_v12  ;;  %v348_v14 = vpop.f32.mrf.mxu1 }
  0xab   :  { %v349_v15 = vadd.f32 %v1005_v38, %v348_v14 }
  0xac   :  { %283 = vst.msk [vmem:[%s1560_s7 + $0x20] sm:$0xff] %vm69_vm0, %v196_v13  ;;  %v267_v16 = vpop.f32.mrf.mxu3  ;;  %649 = vmatmul.msk.f32.gmra.mxu0 %vm69_vm0, %v49_v11 }
  0xad   :  { %v501_v17 = vpop.f32.mrf.mxu2  ;;  %v268_v18 = vadd.f32 %v1000_v37, %v267_v16  ;;  %436 = vst.msk [vmem:[%s1561_s8 + $0x20] sm:$0xff] %vm69_vm0, %v349_v15  ;;  %681 = vmatmul.msk.f32.gmra.mxu1 %vm69_vm0, %v49_v11 }
  0xae   :  { %v502_v19 = vadd.f32 %v1013_v40, %v501_v17 }
  0xaf   :  { %307 = vst.msk [vmem:[%s1560_s7 + $0xe0] sm:$0xff] %vm69_vm0, %v268_v18 }
  0xb0   :  { %589 = vst.msk [vmem:[%s1562_s9 + $0x20] sm:$0xff] %vm69_vm0, %v502_v19 }
  0xb1   :  { %722 = vmatmul.msk.f32.gmra.mxu3 %vm69_vm0, %v894_v22  ;;  %v198_v21 = vpop.f32.mrf.mxu0 }
  0xb2   :  { %714 = vmatmul.msk.f32.gmra.mxu2 %vm69_vm0, %v50_v20  ;;  %v199_v23 = vadd.f32 %v1000_v37, %v198_v21  ;;  %v351_v25 = vpop.f32.mrf.mxu1 }
  0xb3   :  { %v352_v27 = vadd.f32 %v1005_v38, %v351_v25 }
  0xb4   :  { %284 = vst.msk [vmem:[%s1560_s7 + $0x28] sm:$0xff] %vm69_vm0, %v199_v23  ;;  %v270_v28 = vpop.f32.mrf.mxu3  ;;  %650 = vmatmul.msk.f32.gmra.mxu0 %vm69_vm0, %v50_v20 }
  0xb5   :  { %v504_v29 = vpop.f32.mrf.mxu2  ;;  %v271_v30 = vadd.f32 %v1000_v37, %v270_v28  ;;  %437 = vst.msk [vmem:[%s1561_s8 + $0x28] sm:$0xff] %vm69_vm0, %v352_v27  ;;  %682 = vmatmul.msk.f32.gmra.mxu1 %vm69_vm0, %v50_v20 }
  0xb6   :  { %v505_v22 = vadd.f32 %v1013_v40, %v504_v29 }
  0xb7   :  { %308 = vst.msk [vmem:[%s1560_s7 + $0xe8] sm:$0xff] %vm69_vm0, %v271_v30 }
  0xb8   :  { %590 = vst.msk [vmem:[%s1562_s9 + $0x28] sm:$0xff] %vm69_vm0, %v505_v22 }
  0xb9   :  { %723 = vmatmul.msk.f32.gmra.mxu3 %vm69_vm0, %v907_v24  ;;  %v201_v32 = vpop.f32.mrf.mxu0 }
  0xba   :  { %715 = vmatmul.msk.f32.gmra.mxu2 %vm69_vm0, %v51_v31  ;;  %v202_v33 = vadd.f32 %v1000_v37, %v201_v32  ;;  %v354_v34 = vpop.f32.mrf.mxu1 }
  0xbb   :  { %v355_v35 = vadd.f32 %v1005_v38, %v354_v34 }
  0xbc   :  { %285 = vst.msk [vmem:[%s1560_s7 + $0x30] sm:$0xff] %vm69_vm0, %v202_v33  ;;  %v273_v36 = vpop.f32.mrf.mxu3  ;;  %651 = vmatmul.msk.f32.gmra.mxu0 %vm69_vm0, %v51_v31 }
  0xbd   :  { %v507_v39 = vpop.f32.mrf.mxu2  ;;  %v274_v41 = vadd.f32 %v1000_v37, %v273_v36  ;;  %438 = vst.msk [vmem:[%s1561_s8 + $0x30] sm:$0xff] %vm69_vm0, %v355_v35  ;;  %683 = vmatmul.msk.f32.gmra.mxu1 %vm69_vm0, %v51_v31 }
  0xbe   :  { %v508_v24 = vadd.f32 %v1013_v40, %v507_v39 }
  0xbf   :  { %309 = vst.msk [vmem:[%s1560_s7 + $0xf0] sm:$0xff] %vm69_vm0, %v274_v41 }
  0xc0   :  { %591 = vst.msk [vmem:[%s1562_s9 + $0x30] sm:$0xff] %vm69_vm0, %v508_v24 }
  0xc1   :  { %724 = vmatmul.msk.f32.gmra.mxu3 %vm69_vm0, %v920_v26  ;;  %v204_v43 = vpop.f32.mrf.mxu0 }
  0xc2   :  { %716 = vmatmul.msk.f32.gmra.mxu2 %vm69_vm0, %v52_v42  ;;  %v205_v44 = vadd.f32 %v1000_v37, %v204_v43  ;;  %v357_v45 = vpop.f32.mrf.mxu1 }
  0xc3   :  { %v358_v46 = vadd.f32 %v1005_v38, %v357_v45 }
  0xc4   :  { %286 = vst.msk [vmem:[%s1560_s7 + $0x38] sm:$0xff] %vm69_vm0, %v205_v44  ;;  %v276_v47 = vpop.f32.mrf.mxu3  ;;  %652 = vmatmul.msk.f32.gmra.mxu0 %vm69_vm0, %v52_v42 }
  0xc5   :  { %v510_v48 = vpop.f32.mrf.mxu2  ;;  %v277_v49 = vadd.f32 %v1000_v37, %v276_v47  ;;  %439 = vst.msk [vmem:[%s1561_s8 + $0x38] sm:$0xff] %vm69_vm0, %v358_v46  ;;  %684 = vmatmul.msk.f32.gmra.mxu1 %vm69_vm0, %v52_v42 }
  0xc6   :  { %v511_v26 = vadd.f32 %v1013_v40, %v510_v48 }
  0xc7   :  { %310 = vst.msk [vmem:[%s1560_s7 + $0xf8] sm:$0xff] %vm69_vm0, %v277_v49 }
  0xc8   :  { %592 = vst.msk [vmem:[%s1562_s9 + $0x38] sm:$0xff] %vm69_vm0, %v511_v26 }
  0xc9   :  { %v207_v50 = vpop.f32.mrf.mxu0 }
  0xca   :  { %v208_v51 = vadd.f32 %v1000_v37, %v207_v50  ;;  %v360_v52 = vpop.f32.mrf.mxu1 }
  0xcb   :  { %v361_v53 = vadd.f32 %v1005_v38, %v360_v52 }
  0xcc   :  { %287 = vst.msk [vmem:[%s1560_s7 + $0x40] sm:$0xff] %vm69_vm0, %v208_v51  ;;  %v408_v54 = vpop.f32.mrf.mxu3 }
  0xcd   :  { %v513_v55 = vpop.f32.mrf.mxu2  ;;  %440 = vst.msk [vmem:[%s1561_s8 + $0x40] sm:$0xff] %vm69_vm0, %v361_v53  ;;  %v409_v56 = vadd.f32 %v1005_v38, %v408_v54 }
  0xce   :  { %v514_v57 = vadd.f32 %v1013_v40, %v513_v55 }
  0xcf   :  { %456 = vst.msk [vmem:[%s1561_s8 + $0xc0] sm:$0xff] %vm69_vm0, %v409_v56 }
  0xd0   :  { %593 = vst.msk [vmem:[%s1562_s9 + $0x40] sm:$0xff] %vm69_vm0, %v514_v57 }
  0xd1   :  { %v210_v58 = vpop.f32.mrf.mxu0 }
  0xd2   :  { %v211_v59 = vadd.f32 %v1000_v37, %v210_v58  ;;  %v363_v60 = vpop.f32.mrf.mxu1 }
  0xd3   :  { %v364_v61 = vadd.f32 %v1005_v38, %v363_v60 }
  0xd4   :  { %288 = vst.msk [vmem:[%s1560_s7 + $0x48] sm:$0xff] %vm69_vm0, %v211_v59  ;;  %v411_v62 = vpop.f32.mrf.mxu3 }
  0xd5   :  { %v516_v63 = vpop.f32.mrf.mxu2  ;;  %441 = vst.msk [vmem:[%s1561_s8 + $0x48] sm:$0xff] %vm69_vm0, %v364_v61  ;;  %v412_v0 = vadd.f32 %v1005_v38, %v411_v62 }
  0xd6   :  { %v517_v1 = vadd.f32 %v1013_v40, %v516_v63 }
  0xd7   :  { %457 = vst.msk [vmem:[%s1561_s8 + $0xc8] sm:$0xff] %vm69_vm0, %v412_v0 }
  0xd8   :  { %594 = vst.msk [vmem:[%s1562_s9 + $0x48] sm:$0xff] %vm69_vm0, %v517_v1 }
  0xd9   :  { %v213_v2 = vpop.f32.mrf.mxu0 }
  0xda   :  { %v214_v3 = vadd.f32 %v1000_v37, %v213_v2  ;;  %v366_v4 = vpop.f32.mrf.mxu1 }
  0xdb   :  { %v367_v5 = vadd.f32 %v1005_v38, %v366_v4 }
  0xdc   :  { %289 = vst.msk [vmem:[%s1560_s7 + $0x50] sm:$0xff] %vm69_vm0, %v214_v3  ;;  %v414_v6 = vpop.f32.mrf.mxu3 }
  0xdd   :  { %v519_v7 = vpop.f32.mrf.mxu2  ;;  %442 = vst.msk [vmem:[%s1561_s8 + $0x50] sm:$0xff] %vm69_vm0, %v367_v5  ;;  %v415_v8 = vadd.f32 %v1005_v38, %v414_v6 }
  0xde   :  { %v520_v9 = vadd.f32 %v1013_v40, %v519_v7 }
  0xdf   :  { %458 = vst.msk [vmem:[%s1561_s8 + $0xd0] sm:$0xff] %vm69_vm0, %v415_v8 }
  0xe0   :  { %595 = vst.msk [vmem:[%s1562_s9 + $0x50] sm:$0xff] %vm69_vm0, %v520_v9 }
  0xe1   :  { %v216_v10 = vpop.f32.mrf.mxu0 }
  0xe2   :  { %v217_v11 = vadd.f32 %v1000_v37, %v216_v10  ;;  %v369_v12 = vpop.f32.mrf.mxu1 }
  0xe3   :  { %v370_v13 = vadd.f32 %v1005_v38, %v369_v12 }
  0xe4   :  { %290 = vst.msk [vmem:[%s1560_s7 + $0x58] sm:$0xff] %vm69_vm0, %v217_v11  ;;  %v417_v14 = vpop.f32.mrf.mxu3 }
  0xe5   :  { %v522_v15 = vpop.f32.mrf.mxu2  ;;  %443 = vst.msk [vmem:[%s1561_s8 + $0x58] sm:$0xff] %vm69_vm0, %v370_v13  ;;  %v418_v16 = vadd.f32 %v1005_v38, %v417_v14 }
  0xe6   :  { %v523_v17 = vadd.f32 %v1013_v40, %v522_v15 }
  0xe7   :  { %459 = vst.msk [vmem:[%s1561_s8 + $0xd8] sm:$0xff] %vm69_vm0, %v418_v16 }
  0xe8   :  { %596 = vst.msk [vmem:[%s1562_s9 + $0x58] sm:$0xff] %vm69_vm0, %v523_v17 }
  0xe9   :  { %v219_v18 = vpop.f32.mrf.mxu0 }
  0xea   :  { %v220_v19 = vadd.f32 %v1000_v37, %v219_v18  ;;  %v372_v20 = vpop.f32.mrf.mxu1 }
  0xeb   :  { %v373_v21 = vadd.f32 %v1005_v38, %v372_v20 }
  0xec   :  { %291 = vst.msk [vmem:[%s1560_s7 + $0x60] sm:$0xff] %vm69_vm0, %v220_v19  ;;  %v420_v23 = vpop.f32.mrf.mxu3 }
  0xed   :  { %v525_v25 = vpop.f32.mrf.mxu2  ;;  %444 = vst.msk [vmem:[%s1561_s8 + $0x60] sm:$0xff] %vm69_vm0, %v373_v21  ;;  %v421_v27 = vadd.f32 %v1005_v38, %v420_v23 }
  0xee   :  { %v526_v28 = vadd.f32 %v1013_v40, %v525_v25 }
  0xef   :  { %460 = vst.msk [vmem:[%s1561_s8 + $0xe0] sm:$0xff] %vm69_vm0, %v421_v27 }
  0xf0   :  { %597 = vst.msk [vmem:[%s1562_s9 + $0x60] sm:$0xff] %vm69_vm0, %v526_v28 }
  0xf1   :  { %v222_v29 = vpop.f32.mrf.mxu0 }
  0xf2   :  { %v223_v30 = vadd.f32 %v1000_v37, %v222_v29  ;;  %v375_v22 = vpop.f32.mrf.mxu1 }
  0xf3   :  { %v376_v31 = vadd.f32 %v1005_v38, %v375_v22 }
  0xf4   :  { %292 = vst.msk [vmem:[%s1560_s7 + $0x68] sm:$0xff] %vm69_vm0, %v223_v30  ;;  %v423_v32 = vpop.f32.mrf.mxu3 }
  0xf5   :  { %v528_v33 = vpop.f32.mrf.mxu2  ;;  %445 = vst.msk [vmem:[%s1561_s8 + $0x68] sm:$0xff] %vm69_vm0, %v376_v31  ;;  %v424_v34 = vadd.f32 %v1005_v38, %v423_v32 }
  0xf6   :  { %v529_v35 = vadd.f32 %v1013_v40, %v528_v33 }
  0xf7   :  { %461 = vst.msk [vmem:[%s1561_s8 + $0xe8] sm:$0xff] %vm69_vm0, %v424_v34 }
  0xf8   :  { %598 = vst.msk [vmem:[%s1562_s9 + $0x68] sm:$0xff] %vm69_vm0, %v529_v35 }
  0xf9   :  { %v225_v36 = vpop.f32.mrf.mxu0 }
  0xfa   :  { %v226_v39 = vadd.f32 %v1000_v37, %v225_v36  ;;  %v378_v41 = vpop.f32.mrf.mxu1 }
  0xfb   :  { %v379_v24 = vadd.f32 %v1005_v38, %v378_v41 }
  0xfc   :  { %293 = vst.msk [vmem:[%s1560_s7 + $0x70] sm:$0xff] %vm69_vm0, %v226_v39  ;;  %v426_v42 = vpop.f32.mrf.mxu3 }
  0xfd   :  { %v531_v43 = vpop.f32.mrf.mxu2  ;;  %446 = vst.msk [vmem:[%s1561_s8 + $0x70] sm:$0xff] %vm69_vm0, %v379_v24  ;;  %v427_v44 = vadd.f32 %v1005_v38, %v426_v42 }
  0xfe   :  { %v532_v45 = vadd.f32 %v1013_v40, %v531_v43 }
  0xff   :  { %462 = vst.msk [vmem:[%s1561_s8 + $0xf0] sm:$0xff] %vm69_vm0, %v427_v44 }
 0x100   :  { %599 = vst.msk [vmem:[%s1562_s9 + $0x70] sm:$0xff] %vm69_vm0, %v532_v45 }
 0x101   :  { %v228_v46 = vpop.f32.mrf.mxu0 }
 0x102   :  { %v229_v47 = vadd.f32 %v1000_v37, %v228_v46  ;;  %v381_v48 = vpop.f32.mrf.mxu1 }
 0x103   :  { %v382_v49 = vadd.f32 %v1005_v38, %v381_v48 }
 0x104   :  { %294 = vst.msk [vmem:[%s1560_s7 + $0x78] sm:$0xff] %vm69_vm0, %v229_v47  ;;  %v429_v26 = vpop.f32.mrf.mxu3 }
 0x105   :  { %v534_v50 = vpop.f32.mrf.mxu2  ;;  %447 = vst.msk [vmem:[%s1561_s8 + $0x78] sm:$0xff] %vm69_vm0, %v382_v49  ;;  %v430_v51 = vadd.f32 %v1005_v38, %v429_v26 }
 0x106   :  { %v535_v52 = vadd.f32 %v1013_v40, %v534_v50 }
 0x107   :  { %463 = vst.msk [vmem:[%s1561_s8 + $0xf8] sm:$0xff] %vm69_vm0, %v430_v51 }
 0x108   :  { %600 = vst.msk [vmem:[%s1562_s9 + $0x78] sm:$0xff] %vm69_vm0, %v535_v52 }
 0x109   :  { %v231_v53 = vpop.f32.mrf.mxu0 }
 0x10a   :  { %v232_v54 = vadd.f32 %v1000_v37, %v231_v53  ;;  %v384_v55 = vpop.f32.mrf.mxu1 }
 0x10b   :  { %v385_v56 = vadd.f32 %v1005_v38, %v384_v55 }
 0x10c   :  { %295 = vst.msk [vmem:[%s1560_s7 + $0x80] sm:$0xff] %vm69_vm0, %v232_v54  ;;  %v561_v58 = vpop.f32.mrf.mxu3 }
 0x10d   :  { %v537_v57 = vpop.f32.mrf.mxu2  ;;  %448 = vst.msk [vmem:[%s1561_s8 + $0x80] sm:$0xff] %vm69_vm0, %v385_v56  ;;  %v562_v60 = vadd.f32 %v1013_v40, %v561_v58 }
 0x10e   :  { %v538_v59 = vadd.f32 %v1013_v40, %v537_v57 }
 0x10f   :  { %609 = vst.msk [vmem:[%s1562_s9 + $0xc0] sm:$0xff] %vm69_vm0, %v562_v60 }
 0x110   :  { %601 = vst.msk [vmem:[%s1562_s9 + $0x80] sm:$0xff] %vm69_vm0, %v538_v59 }
 0x111   :  { %v234_v61 = vpop.f32.mrf.mxu0 }
 0x112   :  { %v235_v62 = vadd.f32 %v1000_v37, %v234_v61  ;;  %v387_v63 = vpop.f32.mrf.mxu1 }
 0x113   :  { %v388_v0 = vadd.f32 %v1005_v38, %v387_v63 }
 0x114   :  { %296 = vst.msk [vmem:[%s1560_s7 + $0x88] sm:$0xff] %vm69_vm0, %v235_v62  ;;  %v564_v2 = vpop.f32.mrf.mxu3 }
 0x115   :  { %v540_v1 = vpop.f32.mrf.mxu2  ;;  %449 = vst.msk [vmem:[%s1561_s8 + $0x88] sm:$0xff] %vm69_vm0, %v388_v0  ;;  %v565_v4 = vadd.f32 %v1013_v40, %v564_v2 }
 0x116   :  { %v541_v3 = vadd.f32 %v1013_v40, %v540_v1 }
 0x117   :  { %610 = vst.msk [vmem:[%s1562_s9 + $0xc8] sm:$0xff] %vm69_vm0, %v565_v4 }
 0x118   :  { %602 = vst.msk [vmem:[%s1562_s9 + $0x88] sm:$0xff] %vm69_vm0, %v541_v3 }
 0x119   :  { %v237_v5 = vpop.f32.mrf.mxu0 }
 0x11a   :  { %v238_v6 = vadd.f32 %v1000_v37, %v237_v5  ;;  %v390_v7 = vpop.f32.mrf.mxu1 }
 0x11b   :  { %v391_v8 = vadd.f32 %v1005_v38, %v390_v7 }
 0x11c   :  { %297 = vst.msk [vmem:[%s1560_s7 + $0x90] sm:$0xff] %vm69_vm0, %v238_v6  ;;  %v567_v10 = vpop.f32.mrf.mxu3 }
 0x11d   :  { %v543_v9 = vpop.f32.mrf.mxu2  ;;  %450 = vst.msk [vmem:[%s1561_s8 + $0x90] sm:$0xff] %vm69_vm0, %v391_v8  ;;  %v568_v12 = vadd.f32 %v1013_v40, %v567_v10 }
 0x11e   :  { %v544_v11 = vadd.f32 %v1013_v40, %v543_v9 }
 0x11f   :  { %611 = vst.msk [vmem:[%s1562_s9 + $0xd0] sm:$0xff] %vm69_vm0, %v568_v12 }
 0x120   :  { %603 = vst.msk [vmem:[%s1562_s9 + $0x90] sm:$0xff] %vm69_vm0, %v544_v11 }
 0x121   :  { %v240_v13 = vpop.f32.mrf.mxu0 }
 0x122   :  { %v241_v14 = vadd.f32 %v1000_v37, %v240_v13  ;;  %v393_v15 = vpop.f32.mrf.mxu1 }
 0x123   :  { %v394_v16 = vadd.f32 %v1005_v38, %v393_v15 }
 0x124   :  { %298 = vst.msk [vmem:[%s1560_s7 + $0x98] sm:$0xff] %vm69_vm0, %v241_v14  ;;  %v570_v18 = vpop.f32.mrf.mxu3 }
 0x125   :  { %v546_v17 = vpop.f32.mrf.mxu2  ;;  %451 = vst.msk [vmem:[%s1561_s8 + $0x98] sm:$0xff] %vm69_vm0, %v394_v16  ;;  %v571_v20 = vadd.f32 %v1013_v40, %v570_v18 }
 0x126   :  { %v547_v19 = vadd.f32 %v1013_v40, %v546_v17 }
 0x127   :  { %612 = vst.msk [vmem:[%s1562_s9 + $0xd8] sm:$0xff] %vm69_vm0, %v571_v20 }
 0x128   :  { %604 = vst.msk [vmem:[%s1562_s9 + $0x98] sm:$0xff] %vm69_vm0, %v547_v19 }
 0x129   :  { %v243_v21 = vpop.f32.mrf.mxu0 }
 0x12a   :  { %v244_v23 = vadd.f32 %v1000_v37, %v243_v21  ;;  %v396_v25 = vpop.f32.mrf.mxu1 }
 0x12b   :  { %v397_v27 = vadd.f32 %v1005_v38, %v396_v25 }
 0x12c   :  { %299 = vst.msk [vmem:[%s1560_s7 + $0xa0] sm:$0xff] %vm69_vm0, %v244_v23  ;;  %v573_v29 = vpop.f32.mrf.mxu3 }
 0x12d   :  { %v549_v28 = vpop.f32.mrf.mxu2  ;;  %452 = vst.msk [vmem:[%s1561_s8 + $0xa0] sm:$0xff] %vm69_vm0, %v397_v27  ;;  %v574_v22 = vadd.f32 %v1013_v40, %v573_v29 }
 0x12e   :  { %v550_v30 = vadd.f32 %v1013_v40, %v549_v28 }
 0x12f   :  { %613 = vst.msk [vmem:[%s1562_s9 + $0xe0] sm:$0xff] %vm69_vm0, %v574_v22 }
 0x130   :  { %605 = vst.msk [vmem:[%s1562_s9 + $0xa0] sm:$0xff] %vm69_vm0, %v550_v30 }
 0x131   :  { %v246_v31 = vpop.f32.mrf.mxu0 }
 0x132   :  { %v247_v32 = vadd.f32 %v1000_v37, %v246_v31  ;;  %v399_v33 = vpop.f32.mrf.mxu1 }
 0x133   :  { %v400_v34 = vadd.f32 %v1005_v38, %v399_v33 }
 0x134   :  { %300 = vst.msk [vmem:[%s1560_s7 + $0xa8] sm:$0xff] %vm69_vm0, %v247_v32  ;;  %v576_v36 = vpop.f32.mrf.mxu3 }
 0x135   :  { %v552_v35 = vpop.f32.mrf.mxu2  ;;  %453 = vst.msk [vmem:[%s1561_s8 + $0xa8] sm:$0xff] %vm69_vm0, %v400_v34  ;;  %v577_v41 = vadd.f32 %v1013_v40, %v576_v36 }
 0x136   :  { %v553_v39 = vadd.f32 %v1013_v40, %v552_v35 }
 0x137   :  { %614 = vst.msk [vmem:[%s1562_s9 + $0xe8] sm:$0xff] %vm69_vm0, %v577_v41 }
 0x138   :  { %606 = vst.msk [vmem:[%s1562_s9 + $0xa8] sm:$0xff] %vm69_vm0, %v553_v39 }
 0x139   :  { %v249_v24 = vpop.f32.mrf.mxu0 }
 0x13a   :  { %v250_v42 = vadd.f32 %v1000_v37, %v249_v24  ;;  %v402_v43 = vpop.f32.mrf.mxu1 }
 0x13b   :  { %v403_v44 = vadd.f32 %v1005_v38, %v402_v43 }
 0x13c   :  { %301 = vst.msk [vmem:[%s1560_s7 + $0xb0] sm:$0xff] %vm69_vm0, %v250_v42  ;;  %v579_v46 = vpop.f32.mrf.mxu3 }
 0x13d   :  { %v555_v45 = vpop.f32.mrf.mxu2  ;;  %454 = vst.msk [vmem:[%s1561_s8 + $0xb0] sm:$0xff] %vm69_vm0, %v403_v44  ;;  %v580_v48 = vadd.f32 %v1013_v40, %v579_v46 }
 0x13e   :  { %v556_v47 = vadd.f32 %v1013_v40, %v555_v45 }
 0x13f   :  { %615 = vst.msk [vmem:[%s1562_s9 + $0xf0] sm:$0xff] %vm69_vm0, %v580_v48 }
 0x140   :  { %607 = vst.msk [vmem:[%s1562_s9 + $0xb0] sm:$0xff] %vm69_vm0, %v556_v47 }
 0x141   :  { %v252_v49 = vpop.f32.mrf.mxu0 }
 0x142   :  { %v253_v26 = vadd.f32 %v1000_v37, %v252_v49  ;;  %v405_v50 = vpop.f32.mrf.mxu1 }
 0x143   :  { %v406_v51 = vadd.f32 %v1005_v38, %v405_v50 }
 0x144   :  { %302 = vst.msk [vmem:[%s1560_s7 + $0xb8] sm:$0xff] %vm69_vm0, %v253_v26  ;;  %v582_v53 = vpop.f32.mrf.mxu3 }
 0x145   :  { %v558_v52 = vpop.f32.mrf.mxu2  ;;  %455 = vst.msk [vmem:[%s1561_s8 + $0xb8] sm:$0xff] %vm69_vm0, %v406_v51  ;;  %v583_v55 = vadd.f32 %v1013_v40, %v582_v53 }
 0x146   :  { %v559_v54 = vadd.f32 %v1013_v40, %v558_v52 }
 0x147   :  { %616 = vst.msk [vmem:[%s1562_s9 + $0xf8] sm:$0xff] %vm69_vm0, %v583_v55 }
 0x148   :  { %608 = vst.msk [vmem:[%s1562_s9 + $0xb8] sm:$0xff] %vm69_vm0, %v559_v54 }

// kernel: self_attention.3
= control target key start
LH: loop header
LB: loop body
LE: loop exit
PB: predicated region body
PF: predicated region fallthrough
CT: control target
= control target key end

     0   :  { %s1714_s12 = smov 0   ;;  %s1716_s13 = smov 0   ;;  %s2344_s0 = inlined_call_operand.vmem [shape: f32[2,128,32], index: 0, kind: input, shape index: {}]   ;;  %s2345_s1 = inlined_call_operand.vmem [shape: f32[2,128,32], index: 1, kind: input, shape index: {}]   ;;  %s2346_s2 = inlined_call_operand.vmem [shape: f32[2,128,32], index: 2, kind: input, shape index: {}]   ;;  %s2347_s3 = inlined_call_operand.vmem [shape: f32[2,128,32], index: 3, kind: output, shape index: {}]  }
   0x1   :  { %s1718_s14 = smov 0  }
   0x2 LB: > { %s32_s15 = sadd.s32 1, %s1685_s13  ;;  %p1430_p0 = scmp.ge.s32.totalorder %s1689_s14, 1  ;;  %s1689_s14 = sphi %s1718_s14, %s13_s14   ;;  %s1685_s13 = sphi %s1716_s13, %s2349_s13   ;;  %s1681_s12 = sphi %s1714_s12, %s2348_s12  }
   0x3   : > { %p34_p1 = scmp.ge.s32.totalorder %s32_s15, 2  ;;  %p199_p2 = scmp.lt.s32.totalorder %s1689_s14, 3 }
   0x5   : > { %s2351_s15 = smov (%p34_p1, %s32_s15), 0  ;;  %p200_p3 = pnand %p1430_p0, %p199_p2 }
   0x6   : > { %p250_p4 = scmp.lt.s32.totalorder (!%p200_p3), %s1681_s12, 1 }
   0x7   : > { %203 = sbr.rel (%p200_p3) target bundleno = 805 (0x325), region = 32 }
   0xc   : > { %s2353_s12 = smov (!%p250_p4, %s1681_s12), 1  ;;  %vm326_vm0 = vcmask 261120   ;;  %v538_v32 = vlaneseq  ;;  %vm293_vm2 = vcmask 7168   ;;  %v1691_v52 = vmov -inf  }
   0xd   : > { %s1732_s16 = sshll.u32 %s2353_s12, 7  ;;  %294 = vst.msk [vmem:[#allocation2] sm:$0xff] %vm293_vm2, %v1691_v52 }
   0xe   : > { %s1738_s19 = scalar_lea.vmem %s2345_s1, %s1732_s16  ;;  %s1805_s22 = scalar_lea.vmem %s2344_s0, %s1732_s16  ;;  %v1842_v33 = vand.u32 127, %v538_v32  ;;  %295 = vst.msk [vmem:[#allocation2 + $0x8] sm:$0xff] %vm293_vm2, %v1691_v52 }
   0xf   : > { %v374_v0 = vld [vmem:[%s1738_s19 + $0x78] sm:$0xff]  ;;  %v373_v1 = vld [vmem:[%s1738_s19 + $0x70] sm:$0xff]  ;;  %v372_v2 = vld [vmem:[%s1738_s19 + $0x68] sm:$0xff]  ;;  %296 = vst.msk [vmem:[#allocation2 + $0x10] sm:$0xff] %vm293_vm2, %v1691_v52  ;;  %s2091_s25 = scalar_lea.vmem %s2346_s2, %s1732_s16  ;;  %s2301_s28 = scalar_lea.vmem %s2347_s3, %s1732_s16 }
  0x10   : > { %1439 = vmatpush.xpose.msk.msra.mxu0 %vm326_vm0, %v374_v0  ;;  %1477 = vmatpush.xpose.msk.msra.mxu2 %vm326_vm0, %v374_v0  ;;  %v371_v3 = vld [vmem:[%s1738_s19 + $0x60] sm:$0xff]  ;;  %v370_v4 = vld [vmem:[%s1738_s19 + $0x58] sm:$0xff]  ;;  %v369_v5 = vld [vmem:[%s1738_s19 + $0x50] sm:$0xff]  ;;  %vm542_vm1 = vcmp.lt.s32.totalorder %v1842_v33, 8  ;;  %297 = vst.msk [vmem:[#allocation2 + $0x18] sm:$0xff] %vm293_vm2, %v1691_v52 }
  0x11   : > { %1478 = vmatpush.xpose.msk.msra.mxu3 %vm326_vm0, %v374_v0  ;;  %v368_v6 = vld [vmem:[%s1738_s19 + $0x48] sm:$0xff]  ;;  %v367_v7 = vld [vmem:[%s1738_s19 + $0x40] sm:$0xff]  ;;  %v366_v8 = vld [vmem:[%s1738_s19 + $0x38] sm:$0xff]  ;;  %298 = vst.msk [vmem:[#allocation2 + $0x20] sm:$0xff] %vm293_vm2, %v1691_v52 }
  0x12   : > { %v365_v9 = vld [vmem:[%s1738_s19 + $0x30] sm:$0xff]  ;;  %v364_v10 = vld [vmem:[%s1738_s19 + $0x28] sm:$0xff]  ;;  %v363_v11 = vld [vmem:[%s1738_s19 + $0x20] sm:$0xff]  ;;  %299 = vst.msk [vmem:[#allocation2 + $0x28] sm:$0xff] %vm293_vm2, %v1691_v52 }
  0x13   : > { %v362_v12 = vld [vmem:[%s1738_s19 + $0x18] sm:$0xff]  ;;  %v361_v13 = vld [vmem:[%s1738_s19 + $0x10] sm:$0xff]  ;;  %v360_v14 = vld [vmem:[%s1738_s19 + $0x8] sm:$0xff]  ;;  %300 = vst.msk [vmem:[#allocation2 + $0x30] sm:$0xff] %vm293_vm2, %v1691_v52 }
  0x14   : > { %1440 = vmatpush.xpose.msk.msra.mxu0 %vm326_vm0, %v373_v1  ;;  %1479 = vmatpush.xpose.msk.msra.mxu2 %vm326_vm0, %v373_v1  ;;  %v359_v15 = vld [vmem:[%s1738_s19] sm:$0xff]  ;;  %v348_v17 = vld [vmem:[%s1805_s22 + $0x28] sm:$0xff]  ;;  %v349_v19 = vld [vmem:[%s1805_s22 + $0x30] sm:$0xff]  ;;  %301 = vst.msk [vmem:[#allocation2 + $0x38] sm:$0xff] %vm293_vm2, %v1691_v52 }
  0x15   : > { %1480 = vmatpush.xpose.msk.msra.mxu3 %vm326_vm0, %v373_v1  ;;  %v343_v16 = vld [vmem:[%s1805_s22] sm:$0xff]  ;;  %v344_v20 = vld [vmem:[%s1805_s22 + $0x8] sm:$0xff]  ;;  %v350_v22 = vld [vmem:[%s1805_s22 + $0x38] sm:$0xff]  ;;  %302 = vst.msk [vmem:[#allocation2 + $0x40] sm:$0xff] %vm293_vm2, %v1691_v52 }
  0x16   : > { %v355_v18 = vld [vmem:[%s1805_s22 + $0x60] sm:$0xff]  ;;  %v356_v21 = vld [vmem:[%s1805_s22 + $0x68] sm:$0xff]  ;;  %v345_v23 = vld [vmem:[%s1805_s22 + $0x10] sm:$0xff]  ;;  %303 = vst.msk [vmem:[#allocation2 + $0x48] sm:$0xff] %vm293_vm2, %v1691_v52 }
  0x17   : > { %v357_v24 = vld [vmem:[%s1805_s22 + $0x70] sm:$0xff]  ;;  %v351_v25 = vld [vmem:[%s1805_s22 + $0x40] sm:$0xff]  ;;  %v346_v26 = vld [vmem:[%s1805_s22 + $0x18] sm:$0xff]  ;;  %304 = vst.msk [vmem:[#allocation2 + $0x50] sm:$0xff] %vm293_vm2, %v1691_v52 }
  0x18   : > { %1441 = vmatpush.xpose.msk.msra.mxu0 %vm326_vm0, %v372_v2  ;;  %1481 = vmatpush.xpose.msk.msra.mxu2 %vm326_vm0, %v372_v2  ;;  %v358_v27 = vld [vmem:[%s1805_s22 + $0x78] sm:$0xff]  ;;  %v347_v28 = vld [vmem:[%s1805_s22 + $0x20] sm:$0xff]  ;;  %v352_v29 = vld [vmem:[%s1805_s22 + $0x48] sm:$0xff]  ;;  %305 = vst.msk [vmem:[#allocation2 + $0x58] sm:$0xff] %vm293_vm2, %v1691_v52 }
  0x19   : > { %1482 = vmatpush.xpose.msk.msra.mxu3 %vm326_vm0, %v372_v2  ;;  %v353_v30 = vld [vmem:[%s1805_s22 + $0x50] sm:$0xff]  ;;  %v354_v31 = vld [vmem:[%s1805_s22 + $0x58] sm:$0xff]  ;;  %306 = vst.msk [vmem:[#allocation2 + $0x60] sm:$0xff] %vm293_vm2, %v1691_v52 }
  0x1a   : > { %307 = vst.msk [vmem:[#allocation2 + $0x68] sm:$0xff] %vm293_vm2, %v1691_v52 }
  0x1b   : > { %308 = vst.msk [vmem:[#allocation2 + $0x70] sm:$0xff] %vm293_vm2, %v1691_v52  ;;  %v566_v33 = vld [vmem:[#allocation2 + $0x38] sm:$0xff] }
  0x1c   : > { %1442 = vmatpush.xpose.msk.msra.mxu0 %vm326_vm0, %v371_v3  ;;  %1483 = vmatpush.xpose.msk.msra.mxu2 %vm326_vm0, %v371_v3  ;;  %309 = vst.msk [vmem:[#allocation2 + $0x78] sm:$0xff] %vm293_vm2, %v1691_v52  ;;  %v2031_v32 = vld [vmem:[#allocation2 + $0x40] sm:$0xff] }
  0x1d   : > { %1484 = vmatpush.xpose.msk.msra.mxu3 %vm326_vm0, %v371_v3  ;;  %v1692_v3 = vmov 0  }
  0x1e   : > { %1568 = vset.pattern.permute.xlu1 %v1692_v3  ;;  %1569 = vset.pattern.permute.xlu2 %v1692_v3 }
  0x1f   : > { %1570 = vset.pattern.permute.xlu0 %v1692_v3 }
  0x20   : > { %1443 = vmatpush.xpose.msk.msra.mxu0 %vm326_vm0, %v370_v4  ;;  %1485 = vmatpush.xpose.msk.msra.mxu2 %vm326_vm0, %v370_v4 }
  0x21   : > { %1486 = vmatpush.xpose.msk.msra.mxu3 %vm326_vm0, %v370_v4  ;;  %v1693_v4 = vmov 0.0  }
  0x22   : > { %328 = vst.msk [vmem:[#allocation4 + $0x8] sm:$0xff] %vm326_vm0, %v1693_v4 }
  0x23   : > { %310 = vst.msk [vmem:[#allocation3] sm:$0xff] %vm293_vm2, %v1693_v4 }
  0x24   : > { %1444 = vmatpush.xpose.msk.msra.mxu0 %vm326_vm0, %v369_v5  ;;  %1487 = vmatpush.xpose.msk.msra.mxu2 %vm326_vm0, %v369_v5  ;;  %311 = vst.msk [vmem:[#allocation3 + $0x8] sm:$0xff] %vm293_vm2, %v1693_v4 }
  0x25   : > { %1488 = vmatpush.xpose.msk.msra.mxu3 %vm326_vm0, %v369_v5  ;;  %312 = vst.msk [vmem:[#allocation3 + $0x10] sm:$0xff] %vm293_vm2, %v1693_v4  ;;  %v1956_v5 = vld [vmem:[#allocation2] sm:$0xff] }
  0x26   : > { %313 = vst.msk [vmem:[#allocation3 + $0x18] sm:$0xff] %vm293_vm2, %v1693_v4 }
  0x27   : > { %314 = vst.msk [vmem:[#allocation3 + $0x20] sm:$0xff] %vm293_vm2, %v1693_v4 }
  0x28   : > { %1445 = vmatpush.xpose.msk.msra.mxu0 %vm326_vm0, %v368_v6  ;;  %1489 = vmatpush.xpose.msk.msra.mxu2 %vm326_vm0, %v368_v6  ;;  %315 = vst.msk [vmem:[#allocation3 + $0x28] sm:$0xff] %vm293_vm2, %v1693_v4 }
  0x29   : > { %1490 = vmatpush.xpose.msk.msra.mxu3 %vm326_vm0, %v368_v6  ;;  %316 = vst.msk [vmem:[#allocation3 + $0x30] sm:$0xff] %vm293_vm2, %v1693_v4 }
  0x2a   : > { %317 = vst.msk [vmem:[#allocation3 + $0x38] sm:$0xff] %vm293_vm2, %v1693_v4 }
  0x2b   : > { %318 = vst.msk [vmem:[#allocation3 + $0x40] sm:$0xff] %vm293_vm2, %v1693_v4 }
  0x2c   : > { %1446 = vmatpush.xpose.msk.msra.mxu0 %vm326_vm0, %v367_v7  ;;  %1491 = vmatpush.xpose.msk.msra.mxu2 %vm326_vm0, %v367_v7  ;;  %319 = vst.msk [vmem:[#allocation3 + $0x48] sm:$0xff] %vm293_vm2, %v1693_v4 }
  0x2d   : > { %1492 = vmatpush.xpose.msk.msra.mxu3 %vm326_vm0, %v367_v7  ;;  %320 = vst.msk [vmem:[#allocation3 + $0x50] sm:$0xff] %vm293_vm2, %v1693_v4 }
  0x2e   : > { %321 = vst.msk [vmem:[#allocation3 + $0x58] sm:$0xff] %vm293_vm2, %v1693_v4 }
  0x2f   : > { %322 = vst.msk [vmem:[#allocation3 + $0x60] sm:$0xff] %vm293_vm2, %v1693_v4 }
  0x30   : > { %1447 = vmatpush.xpose.msk.msra.mxu0 %vm326_vm0, %v366_v8  ;;  %1493 = vmatpush.xpose.msk.msra.mxu2 %vm326_vm0, %v366_v8  ;;  %323 = vst.msk [vmem:[#allocation3 + $0x68] sm:$0xff] %vm293_vm2, %v1693_v4 }
  0x31   : > { %1494 = vmatpush.xpose.msk.msra.mxu3 %vm326_vm0, %v366_v8  ;;  %324 = vst.msk [vmem:[#allocation3 + $0x70] sm:$0xff] %vm293_vm2, %v1693_v4  ;;  %v1969_v8 = vld [vmem:[#allocation2 + $0x28] sm:$0xff] }
  0x32   : > { %325 = vst.msk [vmem:[#allocation3 + $0x78] sm:$0xff] %vm293_vm2, %v1693_v4 }
  0x33   : > { %327 = vst.msk [vmem:[#allocation4] sm:$0xff] %vm326_vm0, %v1693_v4 }
  0x34   : > { %1448 = vmatpush.xpose.msk.msra.mxu0 %vm326_vm0, %v365_v9  ;;  %1495 = vmatpush.xpose.msk.msra.mxu2 %vm326_vm0, %v365_v9  ;;  %329 = vst.msk [vmem:[#allocation4 + $0x10] sm:$0xff] %vm326_vm0, %v1693_v4 }
  0x35   : > { %1496 = vmatpush.xpose.msk.msra.mxu3 %vm326_vm0, %v365_v9  ;;  %330 = vst.msk [vmem:[#allocation4 + $0x18] sm:$0xff] %vm326_vm0, %v1693_v4 }
  0x36   : > { %331 = vst.msk [vmem:[#allocation4 + $0x20] sm:$0xff] %vm326_vm0, %v1693_v4 }
  0x37   : > { %332 = vst.msk [vmem:[#allocation4 + $0x28] sm:$0xff] %vm326_vm0, %v1693_v4 }
  0x38   : > { %1449 = vmatpush.xpose.msk.msra.mxu0 %vm326_vm0, %v364_v10  ;;  %1497 = vmatpush.xpose.msk.msra.mxu2 %vm326_vm0, %v364_v10  ;;  %333 = vst.msk [vmem:[#allocation4 + $0x30] sm:$0xff] %vm326_vm0, %v1693_v4 }
  0x39   : > { %1498 = vmatpush.xpose.msk.msra.mxu3 %vm326_vm0, %v364_v10  ;;  %v1973_v10 = vld [vmem:[#allocation2 + $0x60] sm:$0xff]  ;;  %334 = vst.msk [vmem:[#allocation4 + $0x38] sm:$0xff] %vm326_vm0, %v1693_v4 }
  0x3a   : > { %335 = vst.msk [vmem:[#allocation4 + $0x40] sm:$0xff] %vm326_vm0, %v1693_v4 }
  0x3b   : > { %336 = vst.msk [vmem:[#allocation4 + $0x48] sm:$0xff] %vm326_vm0, %v1693_v4 }
  0x3c   : > { %1450 = vmatpush.xpose.msk.msra.mxu0 %vm326_vm0, %v363_v11  ;;  %1499 = vmatpush.xpose.msk.msra.mxu2 %vm326_vm0, %v363_v11  ;;  %337 = vst.msk [vmem:[#allocation4 + $0x50] sm:$0xff] %vm326_vm0, %v1693_v4 }
  0x3d   : > { %1500 = vmatpush.xpose.msk.msra.mxu3 %vm326_vm0, %v363_v11  ;;  %338 = vst.msk [vmem:[#allocation4 + $0x58] sm:$0xff] %vm326_vm0, %v1693_v4 }
  0x3e   : > { %339 = vst.msk [vmem:[#allocation4 + $0x60] sm:$0xff] %vm326_vm0, %v1693_v4 }
  0x3f   : > { %340 = vst.msk [vmem:[#allocation4 + $0x68] sm:$0xff] %vm326_vm0, %v1693_v4 }
  0x40   : > { %1451 = vmatpush.xpose.msk.msra.mxu0 %vm326_vm0, %v362_v12  ;;  %1501 = vmatpush.xpose.msk.msra.mxu2 %vm326_vm0, %v362_v12  ;;  %341 = vst.msk [vmem:[#allocation4 + $0x70] sm:$0xff] %vm326_vm0, %v1693_v4 }
  0x41   : > { %1502 = vmatpush.xpose.msk.msra.mxu3 %vm326_vm0, %v362_v12  ;;  %342 = vst.msk [vmem:[#allocation4 + $0x78] sm:$0xff] %vm326_vm0, %v1693_v4  ;;  %v2062_v4 = vld [vmem:[#allocation2 + $0x50] sm:$0xff] }
  0x44   : > { %1452 = vmatpush.xpose.msk.msra.mxu0 %vm326_vm0, %v361_v13  ;;  %1503 = vmatpush.xpose.msk.msra.mxu2 %vm326_vm0, %v361_v13 }
  0x45   : > { %1504 = vmatpush.xpose.msk.msra.mxu3 %vm326_vm0, %v361_v13 }
  0x48   : > { %1453 = vmatpush.xpose.msk.msra.mxu0 %vm326_vm0, %v360_v14  ;;  %1505 = vmatpush.xpose.msk.msra.mxu2 %vm326_vm0, %v360_v14 }
  0x49   : > { %1506 = vmatpush.xpose.msk.msra.mxu3 %vm326_vm0, %v360_v14 }
  0x4c   : > { %1454 = vmatpush.xpose.msk.msra.mxu0 %vm326_vm0, %v359_v15  ;;  %1507 = vmatpush.xpose.msk.msra.mxu2 %vm326_vm0, %v359_v15 }
  0x4d   : > { %1508 = vmatpush.xpose.msk.msra.mxu3 %vm326_vm0, %v359_v15 }
  0x4f   : > { %1455 = vmatmul.msk.f32.vlgmr.msra.gmra.mxu0 %vm326_vm0, %v343_v16  ;;  %1460 = vmatmul.msk.f32.vlgmr.msra.gmra.mxu2 %vm326_vm0, %v348_v17  ;;  %v1994_v16 = vld [vmem:[#allocation2 + $0x68] sm:$0xff] }
  0x50   : > { %1467 = vmatmul.msk.f32.vlgmr.msra.gmra.mxu3 %vm326_vm0, %v355_v18  ;;  %v1997_v17 = vld [vmem:[#allocation2 + $0x8] sm:$0xff] }
  0x57   : > { %1461 = vmatmul.msk.f32.gmra.mxu2 %vm326_vm0, %v349_v19  ;;  %1456 = vmatmul.msk.f32.gmra.mxu0 %vm326_vm0, %v344_v20 }
  0x58   : > { %1468 = vmatmul.msk.f32.gmra.mxu3 %vm326_vm0, %v356_v21 }
  0x5f   : > { %1462 = vmatmul.msk.f32.gmra.mxu2 %vm326_vm0, %v350_v22  ;;  %1457 = vmatmul.msk.f32.gmra.mxu0 %vm326_vm0, %v345_v23  ;;  %v2014_v22 = vld [vmem:[#allocation2 + $0x70] sm:$0xff] }
  0x60   : > { %1469 = vmatmul.msk.f32.gmra.mxu3 %vm326_vm0, %v357_v24  ;;  %v561_v23 = vld [vmem:[#allocation2 + $0x10] sm:$0xff] }
  0x61   : > { %v2016_v24 = vld [vmem:[#allocation2 + $0x30] sm:$0xff] }
  0x67   : > { %1463 = vmatmul.msk.f32.gmra.mxu2 %vm326_vm0, %v351_v25  ;;  %1458 = vmatmul.msk.f32.gmra.mxu0 %vm326_vm0, %v346_v26 }
  0x68   : > { %1470 = vmatmul.msk.f32.gmra.mxu3 %vm326_vm0, %v358_v27 }
  0x6f   : > { %1459 = vmatmul.msk.f32.gmra.mxu0 %vm326_vm0, %v347_v28  ;;  %1464 = vmatmul.msk.f32.gmra.mxu2 %vm326_vm0, %v352_v29 }
  0x77   : > { %1465 = vmatmul.msk.f32.gmra.mxu2 %vm326_vm0, %v353_v30 }
  0x7f   : > { %1466 = vmatmul.msk.f32.gmra.mxu2 %vm326_vm0, %v354_v31 }
  0xcc   : > { %v489_v34 = vpop.f32.mrf.mxu0 }
  0xcd   : > { %v1847_v35 = vsel %vm542_vm1, %v489_v34, -inf  ;;  %v2033_v34 = vld [vmem:[#allocation2 + $0x78] sm:$0xff] }
  0xce   : > { %575 = vmax.xlane.f32.xlu0 %v1847_v35 }
  0xd2   : > { %v504_v36 = vpop.f32.mrf.mxu2 }
  0xd3   : > { %v525_v37 = vpop.f32.mrf.mxu3  ;;  %v1852_v38 = vsel %vm542_vm1, %v504_v36, -inf }
  0xd4   : > { %585 = vmax.xlane.f32.xlu2 %v1852_v38  ;;  %v492_v39 = vpop.f32.mrf.mxu0  ;;  %v1857_v40 = vsel %vm542_vm1, %v525_v37, -inf }
  0xd5   : > { %v1867_v45 = vsel %vm542_vm1, %v492_v39, -inf }
  0xd6   : > { %599 = vmax.xlane.f32.xlu0 %v1857_v40 }
  0xda   : > { %v507_v41 = vpop.f32.mrf.mxu2 }
  0xdb   : > { %v528_v42 = vpop.f32.mrf.mxu3  ;;  %v1882_v50 = vsel %vm542_vm1, %v507_v41, -inf }
  0xdc   : > { %v1862_v43 = vsel %vm542_vm1, %v528_v42, -inf  ;;  %v495_v44 = vpop.f32.mrf.mxu0 }
  0xdd   : > { %601 = vmax.xlane.f32.xlu1 %v1862_v43  ;;  %v1872_v47 = vsel %vm542_vm1, %v495_v44, -inf }
  0xde   : > { %577 = vmax.xlane.f32.xlu0 %v1867_v45 }
  0xe2   : > { %v510_v46 = vpop.f32.mrf.mxu2 }
  0xe3   : > { %v531_v48 = vpop.f32.mrf.mxu3  ;;  %v1898_v56 = vsel %vm542_vm1, %v510_v46, -inf }
  0xe4   : > { %v1876_v49 = vsel %vm542_vm1, %v531_v48, -inf  ;;  %v498_v51 = vpop.f32.mrf.mxu0  ;;  %v2049_v48 = vld [vmem:[#allocation2 + $0x18] sm:$0xff] }
  0xe5   : > { %603 = vmax.xlane.f32.xlu2 %v1876_v49  ;;  %579 = vmax.xlane.f32.xlu1 %v1872_v47  ;;  %v1925_v62 = vsel %vm542_vm1, %v498_v51, -inf  ;;  %v563_v51 = vld [vmem:[#allocation2 + $0x20] sm:$0xff] }
  0xe6   : > { %587 = vmax.xlane.f32.xlu0 %v1882_v50 }
  0xea   : > { %v513_v53 = vpop.f32.mrf.mxu2 }
  0xeb   : > { %v1893_v54 = vsel %vm542_vm1, %v513_v53, -inf  ;;  %v534_v55 = vpop.f32.mrf.mxu3 }
  0xec   : > { %v1902_v57 = vsel %vm542_vm1, %v534_v55, -inf  ;;  %v501_v58 = vpop.f32.mrf.mxu0  ;;  %v2051_v55 = vld [vmem:[#allocation2 + $0x48] sm:$0xff] }
  0xed   : > { %591 = vmax.xlane.f32.xlu2 %v1893_v54  ;;  %589 = vmax.xlane.f32.xlu1 %v1898_v56  ;;  %v1915_v59 = vsel %vm542_vm1, %v501_v58, -inf }
  0xee   : > { %605 = vmax.xlane.f32.xlu0 %v1902_v57 }
  0xf2   : > { %v516_v60 = vpop.f32.mrf.mxu2 }
  0xf3   : > { %v1920_v61 = vsel %vm542_vm1, %v516_v60, -inf }
  0xf5   : > { %581 = vmax.xlane.f32.xlu1 %v1925_v62  ;;  %583 = vmax.xlane.f32.xlu2 %v1915_v59 }
  0xf6   : > { %593 = vmax.xlane.f32.xlu0 %v1920_v61 }
  0xfa   : > { %v519_v63 = vpop.f32.mrf.mxu2 }
  0xfb   : > { %v1933_v0 = vsel %vm542_vm1, %v519_v63, -inf }
  0xfd   : > { %595 = vmax.xlane.f32.xlu1 %v1933_v0 }
 0x102   : > { %v522_v1 = vpop.f32.mrf.mxu2 }
 0x103   : > { %v1938_v2 = vsel %vm542_vm1, %v522_v1, -inf }
 0x104   : > { %597 = vmax.xlane.f32.xlu2 %v1938_v2 }
 0x141   : > { %v576_v6 = vpop.xlane.xlu0 %575 }
 0x142   : > { %v1962_v7 = vmax.f32 %v1956_v5, %v576_v6 }
 0x144   : > { %1121 = vst.msk [vmem:[#allocation2] sm:$0xff] %vm293_vm2, %v1962_v7  ;;  %673 = vperm.xlu1 %1568, %v1962_v7  }
 0x147   : > { %v586_v9 = vpop.xlane.xlu2 %585 }
 0x148   : > { %v1977_v11 = vmax.f32 %v1969_v8, %v586_v9 }
 0x149   : > { %v600_v12 = vpop.xlane.xlu0 %599 }
 0x14a   : > { %v628_v13 = vsub.f32 %v1969_v8, %v1977_v11  ;;  %1126 = vst.msk [vmem:[#allocation2 + $0x28] sm:$0xff] %vm293_vm2, %v1977_v11  ;;  %v1986_v14 = vmax.f32 %v1973_v10, %v600_v12 }
 0x14c   : > { %v635_v15 = vsub.f32 %v1973_v10, %v1986_v14  ;;  %1133 = vst.msk [vmem:[#allocation2 + $0x60] sm:$0xff] %vm293_vm2, %v1986_v14 }
 0x150   : > { %v602_v18 = vpop.xlane.xlu1 %601 }
 0x151   : > { %v2002_v19 = vmax.f32 %v1994_v16, %v602_v18  ;;  %v578_v20 = vpop.xlane.xlu0 %577 }
 0x152   : > { %v2006_v21 = vmax.f32 %v1997_v17, %v578_v20 }
 0x153   : > { %1134 = vst.msk [vmem:[#allocation2 + $0x68] sm:$0xff] %vm293_vm2, %v2002_v19 }
 0x154   : > { %1122 = vst.msk [vmem:[#allocation2 + $0x8] sm:$0xff] %vm293_vm2, %v2006_v21  ;;  %678 = vperm.xlu2 %1569, %v2006_v21  }
 0x158   : > { %v604_v25 = vpop.xlane.xlu2 %603  ;;  %v580_v26 = vpop.xlane.xlu1 %579 }
 0x159   : > { %v2019_v27 = vmax.f32 %v2014_v22, %v604_v25  ;;  %v609_v28 = vmax.f32 %v561_v23, %v580_v26  ;;  %v588_v29 = vpop.xlane.xlu0 %587  ;;  %v624_v25 = vsub.f32 %v1997_v17, %v2006_v21 }
 0x15a   : > { %v2022_v30 = vmax.f32 %v2016_v24, %v588_v29 }
 0x15b   : > { %v637_v31 = vsub.f32 %v2014_v22, %v2019_v27  ;;  %1135 = vst.msk [vmem:[#allocation2 + $0x70] sm:$0xff] %vm293_vm2, %v2019_v27  ;;  %683 = vperm.xlu0 %1570, %v609_v28   ;;  %v625_v3 = vsub.f32 %v561_v23, %v609_v28 }
 0x15c   : > { %1123 = vst.msk [vmem:[#allocation2 + $0x10] sm:$0xff] %vm293_vm2, %v609_v28  ;;  %v2078_v28 = vld [vmem:[#allocation2 + $0x58] sm:$0xff] }
 0x15d   : > { %1127 = vst.msk [vmem:[#allocation2 + $0x30] sm:$0xff] %vm293_vm2, %v2022_v30  ;;  %v643_v6 = vmul.f32 1.442695, %v625_v3  ;;  %v1019_v3 = vld [vmem:[%s2091_s25 + $0x58] sm:$0xff] }
 0x15f   : > { %1571 = vpow2.f32 %v643_v6  ;;  %v629_v6 = vsub.f32 %v2016_v24, %v2022_v30 }
 0x160   : > { %v592_v36 = vpop.xlane.xlu2 %591  ;;  %v590_v37 = vpop.xlane.xlu1 %589 }
 0x161   : > { %v2036_v39 = vmax.f32 %v2031_v32, %v592_v36  ;;  %v614_v41 = vmax.f32 %v566_v33, %v590_v37  ;;  %v606_v42 = vpop.xlane.xlu0 %605  ;;  %v623_v36 = vsub.f32 %v1956_v5, %v1962_v7  ;;  %v636_v5 = vsub.f32 %v1994_v16, %v2002_v19  ;;  %v1023_v7 = vld [vmem:[%s2091_s25 + $0x78] sm:$0xff] }
 0x162   : > { %v2039_v44 = vmax.f32 %v2033_v34, %v606_v42  ;;  %v641_v42 = vmul.f32 1.442695, %v624_v25  ;;  %1024 = vmatpush.msrb.mxu0 %v1023_v7  ;;  %1509 = vmatpush.msra.mxu1 %v1023_v7  ;;  %v651_v25 = vmul.f32 1.442695, %v629_v6 }
 0x163   : > { %1129 = vst.msk [vmem:[#allocation2 + $0x40] sm:$0xff] %vm293_vm2, %v2036_v39  ;;  %733 = vperm.xlu0 %1570, %v1986_v14   ;;  %v630_v26 = vsub.f32 %v566_v33, %v614_v41  ;;  %v639_v21 = vmul.f32 1.442695, %v623_v36  ;;  %1510 = vmatpush.msrb.mxu3 %v1023_v7  ;;  %v631_v8 = vsub.f32 %v2031_v32, %v2036_v39  ;;  %v1013_v36 = vld [vmem:[%s2091_s25 + $0x28] sm:$0xff] }
 0x164   : > { %1128 = vst.msk [vmem:[#allocation2 + $0x38] sm:$0xff] %vm293_vm2, %v614_v41  ;;  %v638_v46 = vsub.f32 %v2033_v34, %v2039_v44  ;;  %v1009_v7 = vld [vmem:[%s2091_s25 + $0x8] sm:$0xff] }
 0x165   : > { %1136 = vst.msk [vmem:[#allocation2 + $0x78] sm:$0xff] %vm293_vm2, %v2039_v44  ;;  %v2072_v23 = vpop.eup %1571  ;;  %v653_v17 = vmul.f32 1.442695, %v630_v26 }
 0x168   : > { %v582_v52 = vpop.xlane.xlu1 %581  ;;  %v584_v53 = vpop.xlane.xlu2 %583 }
 0x169   : > { %v610_v58 = vmax.f32 %v2049_v48, %v582_v52  ;;  %v611_v60 = vmax.f32 %v563_v51, %v584_v53  ;;  %v594_v63 = vpop.xlane.xlu0 %593  ;;  %v1021_v52 = vld [vmem:[%s2091_s25 + $0x68] sm:$0xff]  ;;  %v665_v53 = vmul.f32 1.442695, %v636_v5  ;;  %v1010_v5 = vld [vmem:[%s2091_s25 + $0x10] sm:$0xff] }
 0x16a   : > { %v2057_v1 = vmax.f32 %v2051_v55, %v594_v63 }
 0x16b   : > { %1124 = vst.msk [vmem:[#allocation2 + $0x18] sm:$0xff] %vm293_vm2, %v610_v58  ;;  %748 = vperm.xlu0 %1570, %v2039_v44   ;;  %688 = vperm.xlu2 %1569, %v610_v58   ;;  %v627_v18 = vsub.f32 %v563_v51, %v611_v60  ;;  %v626_v51 = vsub.f32 %v2049_v48, %v610_v58 }
 0x16c   : > { %1125 = vst.msk [vmem:[#allocation2 + $0x20] sm:$0xff] %vm293_vm2, %v611_v60  ;;  %693 = vperm.xlu1 %1568, %v611_v60  }
 0x16d   : > { %1130 = vst.msk [vmem:[#allocation2 + $0x48] sm:$0xff] %vm293_vm2, %v2057_v1  ;;  %v647_v20 = vmul.f32 1.442695, %v627_v18  ;;  %v645_v16 = vmul.f32 1.442695, %v626_v51 }
 0x16e   : > { %v649_v18 = vmul.f32 1.442695, %v628_v13  ;;  %v1014_v13 = vld [vmem:[%s2091_s25 + $0x30] sm:$0xff] }
 0x16f   : > { %1573 = vpow2.f32 %v647_v20  ;;  %v1017_v20 = vld [vmem:[%s2091_s25 + $0x48] sm:$0xff] }
 0x170   : > { %v596_v9 = vpop.xlane.xlu1 %595  ;;  %1575 = vpow2.f32 %v641_v42 }
 0x171   : > { %v2065_v12 = vmax.f32 %v2062_v4, %v596_v9  ;;  %1577 = vpow2.f32 %v653_v17  ;;  %v1018_v9 = vld [vmem:[%s2091_s25 + $0x50] sm:$0xff]  ;;  %v1011_v17 = vld [vmem:[%s2091_s25 + $0x18] sm:$0xff] }
 0x172   : > { %1579 = vpow2.f32 %v639_v21  ;;  %v632_v21 = vsub.f32 %v2051_v55, %v2057_v1 }
 0x173   : > { %718 = vperm.xlu0 %1570, %v2057_v1   ;;  %698 = vperm.xlu2 %1569, %v1977_v11   ;;  %1131 = vst.msk [vmem:[#allocation2 + $0x50] sm:$0xff] %vm293_vm2, %v2065_v12  ;;  %v633_v48 = vsub.f32 %v2062_v4, %v2065_v12  ;;  %1581 = vpow2.f32 %v665_v53  ;;  %v1015_v11 = vld [vmem:[%s2091_s25 + $0x38] sm:$0xff] }
 0x174   : > { %703 = vperm.xlu1 %1568, %v2022_v30   ;;  %1583 = vpow2.f32 %v645_v16  ;;  %v1016_v30 = vld [vmem:[%s2091_s25 + $0x40] sm:$0xff]  ;;  %v657_v51 = vmul.f32 1.442695, %v632_v21 }
 0x175   : > { %v2093_v33 = vpop.eup %1573  ;;  %v659_v4 = vmul.f32 1.442695, %v633_v48 }
 0x176   : > { %v2104_v60 = vpop.eup %1575 }
 0x177   : > { %v598_v29 = vpop.xlane.xlu2 %597  ;;  %v2107_v63 = vpop.eup %1577  ;;  %1585 = vpow2.f32 %v659_v4 }
 0x178   : > { %v2083_v37 = vmax.f32 %v2078_v28, %v598_v29  ;;  %v2111_v58 = vpop.eup %1579  ;;  %1587 = vpow2.f32 %v649_v18  ;;  %v655_v29 = vmul.f32 1.442695, %v631_v8 }
 0x179   : > { %v2124_v24 = vpop.eup %1581  ;;  %1589 = vpow2.f32 %v651_v25 }
 0x17a   : > { %1132 = vst.msk [vmem:[#allocation2 + $0x58] sm:$0xff] %vm293_vm2, %v2083_v37  ;;  %v2127_v26 = vpop.eup %1583  ;;  %1591 = vpow2.f32 %v655_v29  ;;  %v634_v55 = vsub.f32 %v2078_v28, %v2083_v37  ;;  %v669_v28 = vmul.f32 1.442695, %v638_v46 }
 0x17b   : > { %924 = vperm.xlu0 %1570, %v2072_v23   ;;  %708 = vperm.xlu2 %1569, %v614_v41   ;;  %v1022_v41 = vld [vmem:[%s2091_s25 + $0x70] sm:$0xff] }
 0x17c   : > { %713 = vperm.xlu1 %1568, %v2036_v39   ;;  %1025 = vmatpush.msrb.mxu0 %v1022_v41  ;;  %v1012_v39 = vld [vmem:[%s2091_s25 + $0x20] sm:$0xff]  ;;  %v661_v22 = vmul.f32 1.442695, %v634_v55 }
 0x17d   : > { %1511 = vmatpush.msra.mxu1 %v1022_v41  ;;  %1512 = vmatpush.msrb.mxu3 %v1022_v41  ;;  %v667_v41 = vmul.f32 1.442695, %v637_v31 }
 0x17e   : > { %1026 = vmatpush.msrb.mxu0 %v1021_v52 }
 0x17f   : > { %1513 = vmatpush.msra.mxu1 %v1021_v52  ;;  %1514 = vmatpush.msrb.mxu3 %v1021_v52  ;;  %v1008_v52 = vld [vmem:[%s2091_s25] sm:$0xff]  ;;  %1593 = vpow2.f32 %v667_v41 }
 0x180   : > { %1595 = vpow2.f32 %v657_v51 }
 0x181   : > { %1597 = vpow2.f32 %v661_v22 }
 0x183   : > { %738 = vperm.xlu2 %1569, %v2002_v19   ;;  %934 = vperm.xlu0 %1570, %v2093_v33   ;;  %v1020_v19 = vld [vmem:[%s2091_s25 + $0x60] sm:$0xff] }
 0x184   : > { %743 = vperm.xlu1 %1568, %v2019_v27   ;;  %1027 = vmatpush.msrb.mxu0 %v1020_v19  ;;  %v663_v27 = vmul.f32 1.442695, %v635_v15 }
 0x185   : > { %1515 = vmatpush.msra.mxu1 %v1020_v19  ;;  %1516 = vmatpush.msrb.mxu3 %v1020_v19 }
 0x186   : > { %1028 = vmatpush.msrb.mxu0 %v1019_v3  ;;  %1599 = vpow2.f32 %v663_v27 }
 0x187   : > { %1517 = vmatpush.msra.mxu1 %v1019_v3  ;;  %1518 = vmatpush.msrb.mxu3 %v1019_v3  ;;  %1601 = vpow2.f32 %v669_v28 }
 0x188   : > { %1029 = vmatpush.msrb.mxu0 %v1018_v9 }
 0x189   : > { %1519 = vmatpush.msra.mxu1 %v1018_v9  ;;  %1520 = vmatpush.msrb.mxu3 %v1018_v9 }
 0x18a   : > { %1030 = vmatpush.msrb.mxu0 %v1017_v20 }
 0x18b   : > { %919 = vperm.xlu2 %1569, %v2104_v60   ;;  %949 = vperm.xlu0 %1570, %v2107_v63  }
 0x18c   : > { %914 = vperm.xlu1 %1568, %v2111_v58   ;;  %1031 = vmatpush.msrb.mxu0 %v1016_v30 }
 0x18d   : > { %1521 = vmatpush.msra.mxu1 %v1017_v20  ;;  %1522 = vmatpush.msrb.mxu3 %v1017_v20 }
 0x18e   : > { %1032 = vmatpush.msrb.mxu0 %v1015_v11 }
 0x18f   : > { %1523 = vmatpush.msra.mxu1 %v1016_v30  ;;  %1524 = vmatpush.msrb.mxu3 %v1016_v30 }
 0x190   : > { %1033 = vmatpush.msrb.mxu0 %v1014_v13 }
 0x191   : > { %1525 = vmatpush.msra.mxu1 %v1015_v11  ;;  %1526 = vmatpush.msrb.mxu3 %v1015_v11 }
 0x192   : > { %1034 = vmatpush.msrb.mxu0 %v1013_v36 }
 0x193   : > { %723 = vperm.xlu2 %1569, %v2065_v12   ;;  %979 = vperm.xlu0 %1570, %v2124_v24   ;;  %v2136_v12 = vpop.eup %1585 }
 0x194   : > { %929 = vperm.xlu1 %1568, %v2127_v26   ;;  %v2139_v32 = vpop.eup %1587  ;;  %1035 = vmatpush.msrb.mxu0 %v1012_v39 }
 0x195   : > { %v2142_v42 = vpop.eup %1589  ;;  %1527 = vmatpush.msra.mxu1 %v1014_v13  ;;  %1528 = vmatpush.msrb.mxu3 %v1014_v13 }
 0x196   : > { %1036 = vmatpush.msrb.mxu0 %v1011_v17  ;;  %v2156_v53 = vpop.eup %1591 }
 0x197   : > { %1529 = vmatpush.msra.mxu1 %v1013_v36  ;;  %1530 = vmatpush.msrb.mxu3 %v1013_v36  ;;  %v2165_v31 = vpop.eup %1593 }
 0x198   : > { %1037 = vmatpush.msrb.mxu0 %v1010_v5  ;;  %v2167_v1 = vpop.eup %1595 }
 0x199   : > { %1531 = vmatpush.msra.mxu1 %v1012_v39  ;;  %1532 = vmatpush.msrb.mxu3 %v1012_v39 }
 0x19a   : > { %1038 = vmatpush.msrb.mxu0 %v1009_v7 }
 0x19b   : > { %939 = vperm.xlu2 %1569, %v2139_v32   ;;  %964 = vperm.xlu0 %1570, %v2136_v12  }
 0x19c   : > { %944 = vperm.xlu1 %1568, %v2142_v42   ;;  %1533 = vmatpush.msra.mxu1 %v1011_v17 }
 0x19d   : > { %1039 = vmatpush.msrb.mxu0 %v1008_v52  ;;  %1534 = vmatpush.msrb.mxu3 %v1011_v17 }
 0x19e   : > { %1535 = vmatpush.msra.mxu1 %v1010_v5 }
 0x19f   : > { %1536 = vmatpush.msrb.mxu3 %v1010_v5 }
 0x1a0   : > { %1537 = vmatpush.msra.mxu1 %v1009_v7 }
 0x1a1   : > { %1538 = vmatpush.msrb.mxu3 %v1009_v7 }
 0x1a2   : > { %1539 = vmatpush.msra.mxu1 %v1008_v52 }
 0x1a3   : > { %954 = vperm.xlu2 %1569, %v2156_v53   ;;  %1540 = vmatpush.msrb.mxu3 %v1008_v52 }
 0x1a4   : > { %728 = vperm.xlu1 %1568, %v2083_v37   ;;  %v2174_v37 = vpop.eup %1597 }
 0x1a5   : > { %v2176_v10 = vpop.eup %1599 }
 0x1a6   : > { %v2181_v48 = vpop.eup %1601 }
 0x1ab   : > { %984 = vperm.xlu2 %1569, %v2165_v31  }
 0x1ac   : > { %959 = vperm.xlu1 %1568, %v2167_v1  }
 0x1ae   : > { %v679_v16 = vpop.permute.xlu2 %678 }
 0x1af   : > { %v752_v3 = vsub.f32 %v1867_v45, %v679_v16 }
 0x1b1   : > { %v769_v34 = vmul.f32 1.442695, %v752_v3 }
 0x1b3   : > { %969 = vperm.xlu2 %1569, %v2174_v37  }
 0x1b4   : > { %974 = vperm.xlu1 %1568, %v2176_v10  }
 0x1b6   : > { %v674_v14 = vpop.permute.xlu1 %673 }
 0x1b7   : > { %v751_v15 = vsub.f32 %v1847_v35, %v674_v14 }
 0x1b9   : > { %v767_v19 = vmul.f32 1.442695, %v751_v15 }
 0x1bb   : > { %1603 = vpow2.f32 %v767_v19 }
 0x1bc   : > { %989 = vperm.xlu1 %1568, %v2181_v48   ;;  %1605 = vpow2.f32 %v769_v34 }
 0x1c1   : > { %v1604_v44 = vpop.eup %1603 }
 0x1c2   : > { %1040 = vmatmul.f32.vlgmr.msrb.gmra.mxu0 %v1604_v44  ;;  %v1606_v6 = vpop.eup %1605 }
 0x1c5   : > { %v689_v46 = vpop.permute.xlu2 %688 }
 0x1c6   : > { %v754_v20 = vsub.f32 %v1925_v62, %v689_v46 }
 0x1c8   : > { %v773_v25 = vmul.f32 1.442695, %v754_v20 }
 0x1ca   : > { %1043 = vmatmul.f32.gmra.mxu0 %v1606_v6 }
 0x1cd   : > { %v684_v9 = vpop.permute.xlu0 %683  ;;  %v699_v4 = vpop.permute.xlu2 %698 }
 0x1ce   : > { %v753_v35 = vsub.f32 %v1872_v47, %v684_v9  ;;  %v756_v45 = vsub.f32 %v1852_v38, %v699_v4 }
 0x1d0   : > { %v771_v18 = vmul.f32 1.442695, %v753_v35  ;;  %v777_v36 = vmul.f32 1.442695, %v756_v45 }
 0x1d2   : > { %1607 = vpow2.f32 %v771_v18 }
 0x1d3   : > { %1609 = vpow2.f32 %v773_v25 }
 0x1d5   : > { %v734_v30 = vpop.permute.xlu0 %733  ;;  %v709_v8 = vpop.permute.xlu2 %708 }
 0x1d6   : > { %v763_v11 = vsub.f32 %v1857_v40, %v734_v30 }
 0x1d8   : > { %v1608_v13 = vpop.eup %1607  ;;  %v791_v29 = vmul.f32 1.442695, %v763_v11 }
 0x1d9   : > { %1046 = vmatmul.f32.vlgmr.msra.gmra.mxu1 %v1608_v13  ;;  %v2190_v17 = vpop.eup %1609 }
 0x1da   : > { %1611 = vpow2.f32 %v791_v29 }
 0x1db   : > { %1613 = vpow2.f32 %v777_v36 }
 0x1dc   : > { %831 = vadd.xlane.f32.xlu2 %v1604_v44 }
 0x1dd   : > { %v739_v47 = vpop.permute.xlu2 %738  ;;  %v749_v28 = vpop.permute.xlu0 %748 }
 0x1de   : > { %v694_v39 = vpop.permute.xlu1 %693  ;;  %v764_v62 = vsub.f32 %v1862_v43, %v739_v47  ;;  %v758_v43 = vsub.f32 %v1898_v56, %v709_v8  ;;  %v766_v16 = vsub.f32 %v1902_v57, %v749_v28  ;;  %v799_v28 = vld [vmem:[#allocation3] sm:$0xff] }
 0x1df   : > { %v755_v38 = vsub.f32 %v1915_v59, %v694_v39 }
 0x1e0   : > { %v2193_v21 = vpop.eup %1611  ;;  %v793_v5 = vmul.f32 1.442695, %v764_v62  ;;  %v781_v27 = vmul.f32 1.442695, %v758_v43  ;;  %v797_v19 = vmul.f32 1.442695, %v766_v16 }
 0x1e1   : > { %v775_v40 = vmul.f32 1.442695, %v755_v38  ;;  %855 = vadd.xlane.f32.xlu0 %v2193_v21  ;;  %1049 = vmatmul.f32.gmra.mxu1 %v2190_v17  ;;  %v1614_v7 = vpop.eup %1613  ;;  %v896_v38 = vld [vmem:[#allocation4] sm:$0xff] }
 0x1e3   : > { %1615 = vpow2.f32 %v775_v40 }
 0x1e4   : > { %1617 = vpow2.f32 %v793_v5  ;;  %841 = vadd.xlane.f32.xlu2 %v1614_v7 }
 0x1e5   : > { %v2199_v22 = vpop.permute.xlu2 %919  ;;  %v719_v46 = vpop.permute.xlu0 %718 }
 0x1e6   : > { %v704_v41 = vpop.permute.xlu1 %703  ;;  %833 = vadd.xlane.f32.xlu1 %v1606_v6  ;;  %v760_v9 = vsub.f32 %v1920_v61, %v719_v46 }
 0x1e7   : > { %v757_v51 = vsub.f32 %v1882_v50, %v704_v41 }
 0x1e8   : > { %v785_v18 = vmul.f32 1.442695, %v760_v9  ;;  %v800_v9 = vld [vmem:[#allocation3 + $0x8] sm:$0xff] }
 0x1e9   : > { %v1616_v52 = vpop.eup %1615  ;;  %v779_v59 = vmul.f32 1.442695, %v757_v51  ;;  %v897_v51 = vld [vmem:[#allocation4 + $0x8] sm:$0xff] }
 0x1ea   : > { %v1618_v55 = vpop.eup %1617  ;;  %1052 = vmatmul.f32.gmra.mxu1 %v1616_v52 }
 0x1eb   : > { %1619 = vpow2.f32 %v779_v59  ;;  %1079 = vmatmul.f32.vlgmr.msrb.gmra.mxu3 %v1618_v55 }
 0x1ec   : > { %1621 = vpow2.f32 %v781_v27 }
 0x1ed   : > { %v724_v56 = vpop.permute.xlu2 %723  ;;  %1623 = vpow2.f32 %v797_v19  ;;  %v925_v36 = vpop.permute.xlu0 %924 }
 0x1ee   : > { %v714_v14 = vpop.permute.xlu1 %713  ;;  %857 = vadd.xlane.f32.xlu1 %v1618_v55  ;;  %v761_v34 = vsub.f32 %v1933_v0, %v724_v56 }
 0x1ef   : > { %v759_v57 = vsub.f32 %v1893_v54, %v714_v14 }
 0x1f0   : > { %v787_v4 = vmul.f32 1.442695, %v761_v34  ;;  %v804_v34 = vld [vmem:[#allocation3 + $0x28] sm:$0xff] }
 0x1f1   : > { %v1620_v15 = vpop.eup %1619  ;;  %v783_v25 = vmul.f32 1.442695, %v759_v57  ;;  %v820_v57 = vmul.f32 %v2139_v32, %v804_v34 }
 0x1f2   : > { %843 = vadd.xlane.f32.xlu0 %v1620_v15  ;;  %1055 = vmatmul.f32.gmra.mxu1 %v1614_v7  ;;  %v1622_v50 = vpop.eup %1621 }
 0x1f3   : > { %v1624_v20 = vpop.eup %1623 }
 0x1f5   : > { %v2212_v47 = vpop.permute.xlu2 %939  ;;  %v2215_v39 = vpop.permute.xlu0 %934 }
 0x1f6   : > { %v744_v3 = vpop.permute.xlu1 %743  ;;  %845 = vadd.xlane.f32.xlu1 %v1622_v50 }
 0x1f7   : > { %v765_v44 = vsub.f32 %v1876_v49, %v744_v3  ;;  %v898_v3 = vld [vmem:[#allocation4 + $0x10] sm:$0xff] }
 0x1f8   : > { %v994_v46 = vmul.f32 %v925_v36, %v898_v3  ;;  %v805_v36 = vld [vmem:[#allocation3 + $0x30] sm:$0xff] }
 0x1f9   : > { %v795_v6 = vmul.f32 1.442695, %v765_v44  ;;  %v801_v3 = vld [vmem:[#allocation3 + $0x10] sm:$0xff] }
 0x1fa   : > { %835 = vadd.xlane.f32.xlu0 %v1608_v13  ;;  %1058 = vmatmul.f32.gmra.mxu1 %v1620_v15  ;;  %v815_v15 = vmul.f32 %v2111_v58, %v799_v28 }
 0x1fb   : > { %1625 = vpow2.f32 %v795_v6 }
 0x1fc   : > { %1627 = vpow2.f32 %v787_v4 }
 0x1fd   : > { %1629 = vpow2.f32 %v785_v18  ;;  %v2217_v62 = vpop.permute.xlu2 %954 }
 0x1fe   : > { %v915_v35 = vpop.permute.xlu1 %914  ;;  %839 = vadd.xlane.f32.xlu1 %v1616_v52  ;;  %1631 = vpow2.f32 %v783_v25 }
 0x1ff   : > { %v992_v40 = vmul.f32 %v915_v35, %v896_v38 }
 0x201   : > { %v1626_v0 = vpop.eup %1625 }
 0x202   : > { %861 = vadd.xlane.f32.xlu0 %v1624_v20  ;;  %859 = vadd.xlane.f32.xlu2 %v1626_v0  ;;  %v1628_v49 = vpop.eup %1627 }
 0x203   : > { %1061 = vmatmul.f32.gmra.mxu1 %v1622_v50  ;;  %1082 = vmatmul.f32.gmra.mxu3 %v1626_v0  ;;  %v1630_v61 = vpop.eup %1629  ;;  %v811_v50 = vld [vmem:[#allocation3 + $0x60] sm:$0xff] }
 0x204   : > { %v1632_v30 = vpop.eup %1631 }
 0x205   : > { %v2221_v5 = vpop.permute.xlu2 %984 }
 0x206   : > { %v2206_v45 = vpop.permute.xlu1 %929  ;;  %851 = vadd.xlane.f32.xlu1 %v1628_v49 }
 0x20a   : > { %849 = vadd.xlane.f32.xlu0 %v1630_v61  ;;  %837 = vadd.xlane.f32.xlu2 %v2190_v17  ;;  %v2219_v17 = vpop.permute.xlu0 %949 }
 0x20b   : > { %1064 = vmatmul.f32.gmra.mxu1 %v1632_v30  ;;  %1085 = vmatmul.f32.gmra.mxu3 %v1624_v20  ;;  %v816_v20 = vmul.f32 %v2104_v60, %v800_v9  ;;  %v803_v9 = vld [vmem:[#allocation3 + $0x20] sm:$0xff] }
 0x20d   : > { %v2229_v52 = vpop.permute.xlu2 %969 }
 0x20e   : > { %v2209_v54 = vpop.permute.xlu1 %944 }
 0x212   : > { %847 = vadd.xlane.f32.xlu2 %v1632_v30  ;;  %v2225_v43 = vpop.permute.xlu0 %979 }
 0x213   : > { %1067 = vmatmul.f32.gmra.mxu1 %v1630_v61  ;;  %v812_v61 = vld [vmem:[#allocation3 + $0x68] sm:$0xff] }
 0x214   : > { %v828_v60 = vmul.f32 %v2124_v24, %v812_v61 }
 0x216   : > { %v729_v8 = vpop.permute.xlu1 %728 }
 0x217   : > { %v762_v11 = vsub.f32 %v1938_v2, %v729_v8 }
 0x219   : > { %v789_v13 = vmul.f32 1.442695, %v762_v11 }
 0x21a   : > { %v2234_v14 = vpop.permute.xlu0 %964 }
 0x21b   : > { %1633 = vpow2.f32 %v789_v13  ;;  %1070 = vmatmul.f32.gmra.mxu1 %v1628_v49 }
 0x21e   : > { %v2223_v2 = vpop.permute.xlu1 %959 }
 0x221   : > { %v1634_v29 = vpop.eup %1633 }
 0x222   : > { %853 = vadd.xlane.f32.xlu2 %v1634_v29 }
 0x223   : > { %1073 = vmatmul.f32.gmra.mxu1 %v1634_v29 }
 0x226   : > { %v2231_v59 = vpop.permute.xlu1 %974 }
 0x22b   : > { %1076 = vmatmul.f32.gmra.mxu1 %v2193_v21  ;;  %v993_v21 = vmul.f32 %v2199_v22, %v897_v51  ;;  %v827_v22 = vmul.f32 %v2176_v10, %v811_v50  ;;  %v899_v10 = vld [vmem:[#allocation4 + $0x18] sm:$0xff] }
 0x22c   : > { %v995_v32 = vmul.f32 %v2206_v45, %v899_v10  ;;  %v821_v45 = vmul.f32 %v2142_v42, %v805_v36  ;;  %v909_v42 = vld [vmem:[#allocation4 + $0x68] sm:$0xff] }
 0x22e   : > { %v2237_v19 = vpop.permute.xlu1 %989 }
 0x23f   : > { %v1041_v7 = vpop.f32.mrf.mxu0 }
 0x240   : > { %v1089_v41 = vadd.f32 %v1041_v7, %v992_v40  ;;  %v900_v7 = vld [vmem:[#allocation4 + $0x20] sm:$0xff] }
 0x241   : > { %v996_v24 = vmul.f32 %v2215_v39, %v900_v7  ;;  %v817_v39 = vmul.f32 %v2072_v23, %v801_v3 }
 0x242   : > { %1105 = vst.msk [vmem:[#allocation4] sm:$0xff] %vm326_vm0, %v1089_v41 }
 0x247   : > { %v1044_v55 = vpop.f32.mrf.mxu0 }
 0x248   : > { %v1090_v27 = vadd.f32 %v1044_v55, %v993_v21  ;;  %v806_v21 = vld [vmem:[#allocation3 + $0x38] sm:$0xff] }
 0x24a   : > { %1106 = vst.msk [vmem:[#allocation4 + $0x8] sm:$0xff] %vm326_vm0, %v1090_v27 }
 0x24f   : > { %v832_v16 = vpop.xlane.xlu2 %831 }
 0x250   : > { %v863_v56 = vadd.f32 %v832_v16, %v815_v15 }
 0x252   : > { %880 = vst.msk [vmem:[#allocation3] sm:$0xff] %vm293_vm2, %v863_v56  ;;  %v822_v56 = vmul.f32 %v2107_v63, %v806_v21  ;;  %v903_v21 = vld [vmem:[#allocation4 + $0x38] sm:$0xff] }
 0x254   : > { %v856_v44 = vpop.xlane.xlu0 %855 }
 0x255   : > { %v875_v6 = vadd.f32 %v856_v44, %v827_v22  ;;  %v901_v44 = vld [vmem:[#allocation4 + $0x28] sm:$0xff] }
 0x256   : > { %v1047_v4 = vpop.f32.mrf.mxu1  ;;  %v997_v63 = vmul.f32 %v2212_v47, %v901_v44  ;;  %v902_v47 = vld [vmem:[#allocation4 + $0x30] sm:$0xff] }
 0x257   : > { %892 = vst.msk [vmem:[#allocation3 + $0x60] sm:$0xff] %vm293_vm2, %v875_v6  ;;  %v1091_v58 = vadd.f32 %v1047_v4, %v994_v46  ;;  %v842_v35 = vpop.xlane.xlu2 %841  ;;  %v1005_v46 = vmul.f32 %v2225_v43, %v909_v42  ;;  %v813_v43 = vld [vmem:[#allocation3 + $0x70] sm:$0xff] }
 0x258   : > { %v868_v18 = vadd.f32 %v842_v35, %v820_v57  ;;  %v829_v61 = vmul.f32 %v2165_v31, %v813_v43 }
 0x259   : > { %1107 = vst.msk [vmem:[#allocation4 + $0x10] sm:$0xff] %vm326_vm0, %v1091_v58  ;;  %v834_v25 = vpop.xlane.xlu1 %833  ;;  %v1140_v0 = vld [vmem:[#allocation3] sm:$0xff] }
 0x25a   : > { %885 = vst.msk [vmem:[#allocation3 + $0x28] sm:$0xff] %vm293_vm2, %v868_v18  ;;  %v864_v49 = vadd.f32 %v834_v25, %v816_v20  ;;  %1635 = vrcp.f32 %v1140_v0  ;;  %v819_v25 = vmul.f32 %v2093_v33, %v803_v9  ;;  %v814_v0 = vld [vmem:[#allocation3 + $0x78] sm:$0xff] }
 0x25c   : > { %881 = vst.msk [vmem:[#allocation3 + $0x8] sm:$0xff] %vm293_vm2, %v864_v49 }
 0x25e   : > { %v1050_v30 = vpop.f32.mrf.mxu1  ;;  %v1152_v8 = vld [vmem:[#allocation3 + $0x60] sm:$0xff] }
 0x25f   : > { %v1092_v11 = vadd.f32 %v1050_v30, %v995_v32  ;;  %1637 = vrcp.f32 %v1152_v8  ;;  %v830_v32 = vmul.f32 %v2181_v48, %v814_v0  ;;  %v809_v8 = vld [vmem:[#allocation3 + $0x50] sm:$0xff]  ;;  %v808_v48 = vld [vmem:[#allocation3 + $0x48] sm:$0xff] }
 0x260   : > { %v1636_v13 = vpop.eup %1635  ;;  %v825_v7 = vmul.f32 %v2136_v12, %v809_v8 }
 0x261   : > { %1108 = vst.msk [vmem:[#allocation4 + $0x18] sm:$0xff] %vm326_vm0, %v1092_v11  ;;  %v858_v29 = vpop.xlane.xlu1 %857  ;;  %1190 = vperm.xlu0 %1570, %v1636_v13   ;;  %v1145_v38 = vld [vmem:[#allocation3 + $0x28] sm:$0xff]  ;;  %v998_v13 = vmul.f32 %v2209_v54, %v902_v47 }
 0x262   : > { %v876_v40 = vadd.f32 %v858_v29, %v828_v60  ;;  %1639 = vrcp.f32 %v1145_v38 }
 0x263   : > { %v1141_v41 = vld [vmem:[#allocation3 + $0x8] sm:$0xff] }
 0x264   : > { %893 = vst.msk [vmem:[#allocation3 + $0x68] sm:$0xff] %vm293_vm2, %v876_v40  ;;  %1641 = vrcp.f32 %v1141_v41  ;;  %v802_v41 = vld [vmem:[#allocation3 + $0x18] sm:$0xff] }
 0x265   : > { %v844_v51 = vpop.xlane.xlu0 %843  ;;  %v1638_v27 = vpop.eup %1637 }
 0x266   : > { %v869_v55 = vadd.f32 %v844_v51, %v821_v45 }
 0x267   : > { %v1053_v28 = vpop.f32.mrf.mxu1 }
 0x268   : > { %v1640_v15 = vpop.eup %1639  ;;  %886 = vst.msk [vmem:[#allocation3 + $0x30] sm:$0xff] %vm293_vm2, %v869_v55  ;;  %v1093_v16 = vadd.f32 %v1053_v28, %v996_v24  ;;  %v824_v24 = vmul.f32 %v2167_v1, %v808_v48  ;;  %v818_v55 = vmul.f32 %v2127_v26, %v802_v41  ;;  %v910_v1 = vld [vmem:[#allocation4 + $0x70] sm:$0xff] }
 0x269   : > { %v846_v50 = vpop.xlane.xlu1 %845  ;;  %1250 = vperm.xlu0 %1570, %v1638_v27   ;;  %1215 = vperm.xlu1 %1568, %v1640_v15  }
 0x26a   : > { %v1642_v22 = vpop.eup %1641  ;;  %1109 = vst.msk [vmem:[#allocation4 + $0x20] sm:$0xff] %vm326_vm0, %v1093_v16  ;;  %v870_v34 = vadd.f32 %v846_v50, %v822_v56  ;;  %v999_v56 = vmul.f32 %v2219_v17, %v903_v21  ;;  %v1006_v17 = vmul.f32 %v2221_v5, %v910_v1  ;;  %v905_v5 = vld [vmem:[#allocation4 + $0x48] sm:$0xff] }
 0x26b   : > { %1195 = vperm.xlu2 %1569, %v1642_v22   ;;  %v807_v22 = vld [vmem:[#allocation3 + $0x40] sm:$0xff]  ;;  %v1001_v0 = vmul.f32 %v2223_v2, %v905_v5 }
 0x26c   : > { %887 = vst.msk [vmem:[#allocation3 + $0x38] sm:$0xff] %vm293_vm2, %v870_v34  ;;  %v904_v34 = vld [vmem:[#allocation4 + $0x40] sm:$0xff]  ;;  %v823_v44 = vmul.f32 %v2156_v53, %v807_v22  ;;  %v911_v53 = vld [vmem:[#allocation4 + $0x78] sm:$0xff] }
 0x26d   : > { %v836_v6 = vpop.xlane.xlu0 %835  ;;  %v1000_v9 = vmul.f32 %v2217_v62, %v904_v34 }
 0x26e   : > { %v865_v4 = vadd.f32 %v836_v6, %v817_v39  ;;  %v1080_v57 = vpop.f32.mrf.mxu3 }
 0x26f   : > { %v1102_v58 = vadd.f32 %v1080_v57, %v1005_v46  ;;  %v1056_v35 = vpop.f32.mrf.mxu1  ;;  %v1146_v18 = vld [vmem:[#allocation3 + $0x30] sm:$0xff] }
 0x270   : > { %882 = vst.msk [vmem:[#allocation3 + $0x10] sm:$0xff] %vm293_vm2, %v865_v4  ;;  %v1094_v20 = vadd.f32 %v1056_v35, %v997_v63  ;;  %1643 = vrcp.f32 %v1146_v18  ;;  %v1153_v35 = vld [vmem:[#allocation3 + $0x68] sm:$0xff] }
 0x271   : > { %1118 = vst.msk [vmem:[#allocation4 + $0x68] sm:$0xff] %vm326_vm0, %v1102_v58  ;;  %v840_v23 = vpop.xlane.xlu1 %839  ;;  %v1176_v34 = vld [vmem:[#allocation4 + $0x20] sm:$0xff] }
 0x272   : > { %1110 = vst.msk [vmem:[#allocation4 + $0x28] sm:$0xff] %vm326_vm0, %v1094_v20  ;;  %v867_v10 = vadd.f32 %v840_v23, %v819_v25  ;;  %v1007_v20 = vmul.f32 %v2237_v19, %v911_v53  ;;  %v906_v19 = vld [vmem:[#allocation4 + $0x50] sm:$0xff] }
 0x273   : > { %v1147_v49 = vld [vmem:[#allocation3 + $0x38] sm:$0xff] }
 0x274   : > { %884 = vst.msk [vmem:[#allocation3 + $0x20] sm:$0xff] %vm293_vm2, %v867_v10  ;;  %1645 = vrcp.f32 %v1147_v49 }
 0x275   : > { %v862_v30 = vpop.xlane.xlu0 %861  ;;  %v860_v33 = vpop.xlane.xlu2 %859 }
 0x276   : > { %v1644_v11 = vpop.eup %1643  ;;  %v878_v60 = vadd.f32 %v862_v30, %v830_v32  ;;  %v877_v29 = vadd.f32 %v860_v33, %v829_v61  ;;  %v810_v32 = vld [vmem:[#allocation3 + $0x58] sm:$0xff] }
 0x277   : > { %v1059_v36 = vpop.f32.mrf.mxu1  ;;  %1220 = vperm.xlu0 %1570, %v1644_v11   ;;  %v1142_v38 = vld [vmem:[#allocation3 + $0x10] sm:$0xff]  ;;  %v826_v30 = vmul.f32 %v2174_v37, %v810_v32 }
 0x278   : > { %895 = vst.msk [vmem:[#allocation3 + $0x78] sm:$0xff] %vm293_vm2, %v878_v60  ;;  %v1095_v40 = vadd.f32 %v1059_v36, %v998_v13  ;;  %1647 = vrcp.f32 %v1142_v38  ;;  %v1002_v60 = vmul.f32 %v2234_v14, %v906_v19  ;;  %v907_v38 = vld [vmem:[#allocation4 + $0x58] sm:$0xff]  ;;  %v908_v14 = vld [vmem:[#allocation4 + $0x60] sm:$0xff] }
 0x279   : > { %894 = vst.msk [vmem:[#allocation3 + $0x70] sm:$0xff] %vm293_vm2, %v877_v29  ;;  %v852_v31 = vpop.xlane.xlu1 %851  ;;  %v1003_v37 = vmul.f32 %v2229_v52, %v907_v38  ;;  %v1177_v22 = vld [vmem:[#allocation4 + $0x28] sm:$0xff] }
 0x27a   : > { %v1646_v45 = vpop.eup %1645  ;;  %1111 = vst.msk [vmem:[#allocation4 + $0x30] sm:$0xff] %vm326_vm0, %v1095_v40  ;;  %v873_v54 = vadd.f32 %v852_v31, %v825_v7 }
 0x27b   : > { %1225 = vperm.xlu2 %1569, %v1646_v45   ;;  %v1144_v51 = vld [vmem:[#allocation3 + $0x20] sm:$0xff] }
 0x27c   : > { %890 = vst.msk [vmem:[#allocation3 + $0x50] sm:$0xff] %vm293_vm2, %v873_v54  ;;  %1649 = vrcp.f32 %v1144_v51  ;;  %v1004_v54 = vmul.f32 %v2231_v59, %v908_v14  ;;  %v1172_v59 = vld [vmem:[#allocation4] sm:$0xff] }
 0x27d   : > { %v850_v12 = vpop.xlane.xlu0 %849  ;;  %v838_v27 = vpop.xlane.xlu2 %837 }
 0x27e   : > { %v1648_v28 = vpop.eup %1647  ;;  %v872_v15 = vadd.f32 %v850_v12, %v824_v24  ;;  %v866_v16 = vadd.f32 %v838_v27, %v818_v55  ;;  %v1173_v24 = vld [vmem:[#allocation4 + $0x8] sm:$0xff] }
 0x27f   : > { %1200 = vperm.xlu1 %1568, %v1648_v28   ;;  %v1155_v11 = vld [vmem:[#allocation3 + $0x78] sm:$0xff] }
 0x280   : > { %889 = vst.msk [vmem:[#allocation3 + $0x48] sm:$0xff] %vm293_vm2, %v872_v15  ;;  %v1062_v50 = vpop.f32.mrf.mxu1  ;;  %v1154_v41 = vld [vmem:[#allocation3 + $0x70] sm:$0xff] }
 0x281   : > { %883 = vst.msk [vmem:[#allocation3 + $0x18] sm:$0xff] %vm293_vm2, %v866_v16  ;;  %v1096_v3 = vadd.f32 %v1062_v50, %v999_v56 }
 0x282   : > { %v1650_v42 = vpop.eup %1649 }
 0x283   : > { %1112 = vst.msk [vmem:[#allocation4 + $0x38] sm:$0xff] %vm326_vm0, %v1096_v3  ;;  %1210 = vperm.xlu2 %1569, %v1650_v42   ;;  %v1150_v26 = vld [vmem:[#allocation3 + $0x50] sm:$0xff] }
 0x284   : > { %1651 = vrcp.f32 %v1150_v26 }
 0x285   : > { %v848_v39 = vpop.xlane.xlu2 %847 }
 0x286   : > { %v1083_v46 = vpop.f32.mrf.mxu3  ;;  %v871_v6 = vadd.f32 %v848_v39, %v823_v44 }
 0x287   : > { %v1103_v63 = vadd.f32 %v1083_v46, %v1006_v17  ;;  %v1149_v25 = vld [vmem:[#allocation3 + $0x48] sm:$0xff] }
 0x288   : > { %888 = vst.msk [vmem:[#allocation3 + $0x40] sm:$0xff] %vm293_vm2, %v871_v6  ;;  %v1065_v4 = vpop.f32.mrf.mxu1  ;;  %v1143_v57 = vld [vmem:[#allocation3 + $0x18] sm:$0xff] }
 0x289   : > { %1119 = vst.msk [vmem:[#allocation4 + $0x70] sm:$0xff] %vm326_vm0, %v1103_v63  ;;  %v1097_v58 = vadd.f32 %v1065_v4, %v1000_v9  ;;  %1653 = vrcp.f32 %v1143_v57  ;;  %v1178_v9 = vld [vmem:[#allocation4 + $0x30] sm:$0xff]  ;;  %v1185_v57 = vld [vmem:[#allocation4 + $0x68] sm:$0xff] }
 0x28a   : > { %v1652_v18 = vpop.eup %1651  ;;  %1655 = vrcp.f32 %v1153_v35  ;;  %v1179_v15 = vld [vmem:[#allocation4 + $0x38] sm:$0xff] }
 0x28b   : > { %1113 = vst.msk [vmem:[#allocation4 + $0x40] sm:$0xff] %vm326_vm0, %v1097_v58  ;;  %1240 = vperm.xlu2 %1569, %v1652_v18   ;;  %v1174_v18 = vld [vmem:[#allocation4 + $0x10] sm:$0xff] }
 0x28e   : > { %v1086_v62 = vpop.f32.mrf.mxu3 }
 0x28f   : > { %v1654_v23 = vpop.eup %1653  ;;  %v1104_v43 = vadd.f32 %v1086_v62, %v1007_v20  ;;  %v1148_v10 = vld [vmem:[#allocation3 + $0x40] sm:$0xff]  ;;  %v1175_v20 = vld [vmem:[#allocation4 + $0x18] sm:$0xff] }
 0x290   : > { %v1068_v47 = vpop.f32.mrf.mxu1  ;;  %1205 = vperm.xlu0 %1570, %v1654_v23   ;;  %1657 = vrcp.f32 %v1148_v10  ;;  %v1656_v61 = vpop.eup %1655 }
 0x291   : > { %1120 = vst.msk [vmem:[#allocation4 + $0x78] sm:$0xff] %vm326_vm0, %v1104_v43  ;;  %v1098_v49 = vadd.f32 %v1068_v47, %v1001_v0  ;;  %1659 = vrcp.f32 %v1149_v25 }
 0x292   : > { %1661 = vrcp.f32 %v1155_v11  ;;  %v1180_v23 = vld [vmem:[#allocation4 + $0x40] sm:$0xff] }
 0x293   : > { %1114 = vst.msk [vmem:[#allocation4 + $0x48] sm:$0xff] %vm326_vm0, %v1098_v49  ;;  %1255 = vperm.xlu2 %1569, %v1656_v61  }
 0x295   : > { %v854_v33 = vpop.xlane.xlu2 %853 }
 0x296   : > { %v1658_v8 = vpop.eup %1657  ;;  %v874_v2 = vadd.f32 %v854_v33, %v826_v30 }
 0x297   : > { %v1660_v13 = vpop.eup %1659  ;;  %1230 = vperm.xlu1 %1568, %v1658_v8  }
 0x298   : > { %891 = vst.msk [vmem:[#allocation3 + $0x58] sm:$0xff] %vm293_vm2, %v874_v2  ;;  %v1071_v29 = vpop.f32.mrf.mxu1  ;;  %1235 = vperm.xlu0 %1570, %v1660_v13   ;;  %v1662_v40 = vpop.eup %1661  ;;  %v1187_v32 = vld [vmem:[#allocation4 + $0x78] sm:$0xff]  ;;  %v1186_v2 = vld [vmem:[#allocation4 + $0x70] sm:$0xff] }
 0x299   : > { %v1099_v36 = vadd.f32 %v1071_v29, %v1002_v60 }
 0x29a   : > { %v1181_v43 = vld [vmem:[#allocation4 + $0x48] sm:$0xff] }
 0x29b   : > { %1115 = vst.msk [vmem:[#allocation4 + $0x50] sm:$0xff] %vm326_vm0, %v1099_v36 }
 0x29f   : > { %v1151_v7 = vld [vmem:[#allocation3 + $0x58] sm:$0xff] }
 0x2a0   : > { %v1074_v31 = vpop.f32.mrf.mxu1  ;;  %1265 = vperm.xlu0 %1570, %v1662_v40   ;;  %1663 = vrcp.f32 %v1151_v7 }
 0x2a1   : > { %v1100_v48 = vadd.f32 %v1074_v31, %v1003_v37  ;;  %1665 = vrcp.f32 %v1154_v41 }
 0x2a2   : > { %v1182_v39 = vld [vmem:[#allocation4 + $0x50] sm:$0xff] }
 0x2a3   : > { %1116 = vst.msk [vmem:[#allocation4 + $0x58] sm:$0xff] %vm326_vm0, %v1100_v48 }
 0x2a6   : > { %v1664_v45 = vpop.eup %1663 }
 0x2a7   : > { %1245 = vperm.xlu1 %1568, %v1664_v45   ;;  %v1666_v52 = vpop.eup %1665 }
 0x2a8   : > { %v1077_v51 = vpop.f32.mrf.mxu1 }
 0x2a9   : > { %v1101_v21 = vadd.f32 %v1077_v51, %v1004_v54 }
 0x2aa   : > { %v1183_v30 = vld [vmem:[#allocation4 + $0x58] sm:$0xff] }
 0x2ab   : > { %1117 = vst.msk [vmem:[#allocation4 + $0x60] sm:$0xff] %vm326_vm0, %v1101_v21 }
 0x2af   : > { %1260 = vperm.xlu1 %1568, %v1666_v52  }
 0x2b2   : > { %v1184_v50 = vld [vmem:[#allocation4 + $0x60] sm:$0xff] }
 0x2c5   : > { %v1196_v55 = vpop.permute.xlu2 %1195 }
 0x2c6   : > { %v1269_v12 = vmul.f32 %v1196_v55, %v1173_v24 }
 0x2c8   : > { %1285 = vst.msk [vmem:[%s2301_s28 + $0x8] sm:$0xff] %vm326_vm0, %v1269_v12 }
 0x2d3   : > { %v1191_v27 = vpop.permute.xlu0 %1190 }
 0x2d4   : > { %v1268_v28 = vmul.f32 %v1191_v27, %v1172_v59 }
 0x2d5   : > { %v1226_v16 = vpop.permute.xlu2 %1225 }
 0x2d6   : > { %1284 = vst.msk [vmem:[%s2301_s28] sm:$0xff] %vm326_vm0, %v1268_v28  ;;  %v1275_v56 = vmul.f32 %v1226_v16, %v1179_v15 }
 0x2d8   : > { %1291 = vst.msk [vmem:[%s2301_s28 + $0x38] sm:$0xff] %vm326_vm0, %v1275_v56 }
 0x2db   : > { %v1251_v3 = vpop.permute.xlu0 %1250  ;;  %v1216_v42 = vpop.permute.xlu1 %1215 }
 0x2dc   : > { %v1280_v1 = vmul.f32 %v1251_v3, %v1184_v50  ;;  %v1273_v26 = vmul.f32 %v1216_v42, %v1177_v22 }
 0x2dd   : > { %v1211_v44 = vpop.permute.xlu2 %1210 }
 0x2de   : > { %1296 = vst.msk [vmem:[%s2301_s28 + $0x60] sm:$0xff] %vm326_vm0, %v1280_v1  ;;  %v1272_v17 = vmul.f32 %v1211_v44, %v1176_v34 }
 0x2df   : > { %1289 = vst.msk [vmem:[%s2301_s28 + $0x28] sm:$0xff] %vm326_vm0, %v1273_v26 }
 0x2e0   : > { %1288 = vst.msk [vmem:[%s2301_s28 + $0x20] sm:$0xff] %vm326_vm0, %v1272_v17 }
 0x2e5   : > { %v1241_v46 = vpop.permute.xlu2 %1240 }
 0x2e6   : > { %v1278_v6 = vmul.f32 %v1241_v46, %v1182_v39 }
 0x2e8   : > { %1294 = vst.msk [vmem:[%s2301_s28 + $0x50] sm:$0xff] %vm326_vm0, %v1278_v6 }
 0x2e9   : > { %v1221_v63 = vpop.permute.xlu0 %1220 }
 0x2ea   : > { %v1274_v4 = vmul.f32 %v1221_v63, %v1178_v9 }
 0x2ec   : > { %1290 = vst.msk [vmem:[%s2301_s28 + $0x30] sm:$0xff] %vm326_vm0, %v1274_v4 }
 0x2ed   : > { %v1256_v58 = vpop.permute.xlu2 %1255 }
 0x2ee   : > { %v1281_v35 = vmul.f32 %v1256_v58, %v1185_v57 }
 0x2f0   : > { %1297 = vst.msk [vmem:[%s2301_s28 + $0x68] sm:$0xff] %vm326_vm0, %v1281_v35 }
 0x2f1   : > { %v1201_v53 = vpop.permute.xlu1 %1200 }
 0x2f2   : > { %v1270_v5 = vmul.f32 %v1201_v53, %v1174_v18 }
 0x2f4   : > { %1286 = vst.msk [vmem:[%s2301_s28 + $0x10] sm:$0xff] %vm326_vm0, %v1270_v5 }
 0x302   : > { %v1206_v62 = vpop.permute.xlu0 %1205 }
 0x303   : > { %v1271_v25 = vmul.f32 %v1206_v62, %v1175_v20 }
 0x305   : > { %1287 = vst.msk [vmem:[%s2301_s28 + $0x18] sm:$0xff] %vm326_vm0, %v1271_v25 }
 0x309   : > { %v1231_v0 = vpop.permute.xlu1 %1230 }
 0x30a   : > { %v1236_v10 = vpop.permute.xlu0 %1235  ;;  %v1276_v47 = vmul.f32 %v1231_v0, %v1180_v23 }
 0x30b   : > { %v1277_v49 = vmul.f32 %v1236_v10, %v1181_v43 }
 0x30c   : > { %1292 = vst.msk [vmem:[%s2301_s28 + $0x40] sm:$0xff] %vm326_vm0, %v1276_v47 }
 0x30d   : > { %1293 = vst.msk [vmem:[%s2301_s28 + $0x48] sm:$0xff] %vm326_vm0, %v1277_v49 }
 0x312   : > { %v1266_v61 = vpop.permute.xlu0 %1265 }
 0x313   : > { %v1283_v19 = vmul.f32 %v1266_v61, %v1187_v32 }
 0x315   : > { %1299 = vst.msk [vmem:[%s2301_s28 + $0x78] sm:$0xff] %vm326_vm0, %v1283_v19 }
 0x319   : > { %v1246_v33 = vpop.permute.xlu1 %1245 }
 0x31a   : > { %v1279_v8 = vmul.f32 %v1246_v33, %v1183_v30 }
 0x31c   : > { %1295 = vst.msk [vmem:[%s2301_s28 + $0x58] sm:$0xff] %vm326_vm0, %v1279_v8 }
 0x321   : > { %v1261_v11 = vpop.permute.xlu1 %1260 }
 0x322   : > { %v1282_v13 = vmul.f32 %v1261_v11, %v1186_v2 }
 0x324   : > { %1298 = vst.msk [vmem:[%s2301_s28 + $0x70] sm:$0xff] %vm326_vm0, %v1282_v13 }
 0x325 PF: > { %s13_s14 = sadd.s32 1, %s1689_s14   ;;  %s2348_s12 = smov %s1685_s13 }
 0x326   : > { %p10_p5 = scmp.ge.s32.totalorder %s13_s14, 4   ;;  %s2349_s13 = smov %s2351_s15 }
 0x328   :  { %12 = sbr.rel (!%p10_p5) target bundleno = 2 (0x2), region = 76 }

</bundles_post_ra>
